<compile_context>
chip_gen: v6e
topology: v6e:2x2x1
jax: 0.10.0
libtpu: 0.0.40
codegen_flags: <defaults>
</compile_context>

<pallas_src>
import functools

import jax
import jax.numpy as jnp
from jax import lax
from jax.experimental import pallas as pl
from jax.experimental.pallas import tpu as pltpu


# ---------------------------------------------------------------------------
# Fused kernel: whole block forward for one image per grid step.
# ---------------------------------------------------------------------------
def _fused_block_kernel(g_ref, x_ref, t_ref, valid_ref,
                        tw_ref, tb_ref,
                        w1_ref, b1_ref,
                        w2_ref, b2_ref,
                        wg_ref, bg_ref,
                        wx_ref, bx_ref,
                        wp_ref, bp_ref,
                        out_ref,
                        pad_ref,
                        *, Wpg, Lg):
    f32, bf16 = jnp.float32, jnp.bfloat16
    body_lo = Wpg + 1                 # lane offset of pixel (0, 0) in the padded slab

    valid = valid_ref[...]            # (1, Lg) f32: 1 on real columns, 0 on junk cols

    # Persistent padded scratch slab.  Pad lanes (and the junk columns inside the
    # body, via the valid mask) must be zero: they are the conv's zero padding.
    # Re-zero unconditionally every step -- cheap, and safe when the "parallel" grid
    # axis is split across TensorCores.
    pad_ref[...] = jnp.zeros_like(pad_ref)

    def stack9():
        """(9*Cout, Lg) bf16: the 9 lane-shifted taps of the padded slab stacked on
        the sublane/contraction axis, so a 3x3 conv is ONE MXU matmul.  The slab is
        f32 (8-row pieces are tile-aligned for the sublane concat); cast once."""
        taps = [pad_ref[:, ky * Wpg + kx: ky * Wpg + kx + Lg]
                for ky in range(3) for kx in range(3)]
        return jnp.concatenate(taps, axis=0).astype(bf16)

    def to_pad(a):
        """Write an f32 (Cout, Lg) activation into the padded slab; junk columns are
        masked to zero (they double as the left/right zero padding of each row)."""
        pad_ref[:, body_lo: body_lo + Lg] = a * valid

    # ---- transform_wx: ConvTranspose(4,2,1) == ONE bf16 matmul over the
    #      phase/tap pre-scattered x slab built by the wrapper.
    x1 = jnp.dot(wx_ref[...], x_ref[0], preferred_element_type=f32) + bx_ref[...]

    # ---- time MLP: temb = relu(W_t t + b_t)  ->  (Cout, 1)   (tiny, stays on VPU)
    temb = jnp.maximum(
        jnp.sum(tw_ref[...] * t_ref[0], axis=-1, keepdims=True) + tb_ref[...], 0.0)

    # ---- conv1 (tap-stacked g built by the wrapper) + ReLU, then + time embedding
    h = jnp.maximum(jnp.dot(w1_ref[...], g_ref[0], preferred_element_type=f32)
                    + b1_ref[...], 0.0) + temb
    to_pad(h)

    # ---- conv2 + ReLU
    h = jnp.maximum(jnp.dot(w2_ref[...], stack9(), preferred_element_type=f32)
                    + b2_ref[...], 0.0)
    to_pad(h)

    # ---- transform_wg: ConvTranspose(3,1,1) == 3x3 conv with flipped kernel
    g1 = jnp.dot(wg_ref[...], stack9(), preferred_element_type=f32) + bg_ref[...]

    # ---- psi = sigmoid(ConvTranspose(3,1,1)(relu(g1 + x1)))
    to_pad(jnp.maximum(g1 + x1, 0.0))
    psi = jax.nn.sigmoid(
        jnp.dot(wp_ref[...], stack9(), preferred_element_type=f32) + bp_ref[...])

    # ---- out = x1 * psi  (lane-dense store; junk columns dropped by the wrapper)
    out_ref[0] = (x1 * psi).astype(out_ref.dtype)


# ---------------------------------------------------------------------------
# Wrapper-side weight re-layout (plain XLA, done once per call)
# ---------------------------------------------------------------------------
def _conv3x3_stacked(w_oihw):
    """Conv2d weight (O, I, 3, 3) -> tap-stacked (O, 9*I) bf16, tap-major."""
    O, I = w_oihw.shape[0], w_oihw.shape[1]
    return jnp.transpose(w_oihw, (0, 2, 3, 1)).reshape(O, 9 * I).astype(jnp.bfloat16)


def _convT3x3_stacked(w_iohw):
    """ConvTranspose2d(3,1,1) weight (I, O, 3, 3) -> tap-stacked (O, 9*I) bf16 of the
    equivalent stride-1 pad-1 conv (in/out swap + spatial flip)."""
    w_conv = jnp.transpose(w_iohw, (1, 0, 2, 3))[:, :, ::-1, ::-1]
    return _conv3x3_stacked(w_conv)


def _convT4x4_s2_stacked(w_iohw):
    """ConvTranspose2d(4,2,1) weight (I, O, 4, 4) -> (O, 16*I) bf16; block order is
    (phase r, s; tap dy, dx):  out[2m+r, 2n+s] += w[:, :, 3-r-2dy, 3-s-2dx]^T @
    x_pad[m+r+dy, n+s+dx]."""
    blocks = [w_iohw[:, :, 3 - r - 2 * dy, 3 - s - 2 * dx].T
              for r in range(2) for s in range(2)
              for dy in range(2) for dx in range(2)]
    return jnp.concatenate(blocks, axis=1).astype(jnp.bfloat16)


# ---------------------------------------------------------------------------
# Wrapper-side input layout plumbing (plain XLA)
# ---------------------------------------------------------------------------
def _g_tap_stack(g_nhwc, Wpg, Lg):
    """NHWC g -> (N, 9*Cin, Lg) bf16: the 9 lane-shifted slices of the zero-padded,
    flattened (row stride Wpg) image, stacked tap-major on the channel axis."""
    N, H, W, C = g_nhwc.shape
    a = jnp.transpose(g_nhwc, (0, 3, 1, 2))                   # NCHW
    a = jnp.pad(a, ((0, 0), (0, 0), (1, 1), (1, 1)))          # spatial zero pad = 1
    a = a.reshape(N, C, (H + 2) * Wpg)
    a = jnp.pad(a, ((0, 0), (0, 0), (0, 2)))                  # room for max tap offset
    taps = [a[:, :, ky * Wpg + kx: ky * Wpg + kx + Lg]
            for ky in range(3) for kx in range(3)]
    return jnp.stack(taps, axis=1).reshape(N, 9 * C, Lg).astype(jnp.bfloat16)


def _x_phase_scatter(x_nhwc, Hg, Wpg, Lg):
    """NHWC x -> (N, 16*Cx, Lg) bf16: for each ConvT(4,2,1) polyphase (r, s) and 2x2
    tap (dy, dx), the 1-padded x values scattered onto the full-resolution
    padded-stride grid.  transform_wx then collapses to a single bf16 matmul."""
    N, Hx, Wx, C = x_nhwc.shape
    a = jnp.transpose(x_nhwc, (0, 3, 1, 2))                   # NCHW
    a = jnp.pad(a, ((0, 0), (0, 0), (1, 1), (1, 1)))          # (N, C, Hx+2, Wx+2)
    pieces = []
    for r in range(2):
        for s in range(2):
            for dy in range(2):
                for dx in range(2):
                    v = a[:, :, r + dy: r + dy + Hx, s + dx: s + dx + Wx]
                    scat = jnp.zeros((N, C, Hg, Wpg), a.dtype)
                    scat = scat.at[:, :, r::2, s: 2 * Wx: 2].set(v)
                    pieces.append(scat.reshape(N, C, Lg))
    return jnp.stack(pieces, axis=1).reshape(N, 16 * C, Lg).astype(jnp.bfloat16)


# ---------------------------------------------------------------------------
# Forward pass
# ---------------------------------------------------------------------------
def attention_upsampling_block(g, x, t, p):
    """Fused forward of AttentionUpsamplingBlock.  g, x: NHWC; t: (N, Tdim).
    Returns NHWC (N, Hg, Wg, Cout).  One pallas_call, one grid step per image."""
    N, Hg, Wg, Cin = g.shape
    _, Hx, Wx, Cx = x.shape
    Cout = p["c1_w"].shape[0]
    Tdim = p["t_w"].shape[0]
    assert (Hg, Wg) == (2 * Hx, 2 * Wx)
    Wpg = Wg + 2
    Lg = Hg * Wpg

    # ---- layout plumbing: lane-dense bf16 operands built once per call ----
    g_stack = _g_tap_stack(g, Wpg, Lg)                  # (N, 9*Cin, Lg)
    x_scat = _x_phase_scatter(x, Hg, Wpg, Lg)           # (N, 16*Cx, Lg)
    t3 = t.reshape(N, 1, Tdim).astype(jnp.float32)
    valid = ((jnp.arange(Lg) % Wpg) < Wg).astype(jnp.float32).reshape(1, Lg)

    col = lambda b: b.reshape(-1, 1).astype(jnp.float32)
    tw = p["t_w"].T.astype(jnp.float32)                 # (Cout, Tdim)
    w1s, w2s = _conv3x3_stacked(p["c1_w"]), _conv3x3_stacked(p["c2_w"])
    wgs, wps = _convT3x3_stacked(p["wg_w"]), _convT3x3_stacked(p["psi_w"])
    wxs = _convT4x4_s2_stacked(p["wx_w"])

    kernel = functools.partial(_fused_block_kernel, Wpg=Wpg, Lg=Lg)

    def full(a):
        nd = a.ndim
        return pl.BlockSpec(a.shape, lambda n: (0,) * nd)

    def per_img(a):
        nd = a.ndim
        return pl.BlockSpec((1,) + a.shape[1:], lambda n: (n,) + (0,) * (nd - 1))

    args = (g_stack, x_scat, t3, valid,
            tw, col(p["t_b"]),
            w1s, col(p["c1_b"]),
            w2s, col(p["c2_b"]),
            wgs, col(p["wg_b"]),
            wxs, col(p["wx_b"]),
            wps, col(p["psi_b"]))
    in_specs = [per_img(g_stack), per_img(x_scat), per_img(t3)] + \
               [full(a) for a in args[3:]]

    out_flat = pl.pallas_call(
        kernel,
        out_shape=jax.ShapeDtypeStruct((N, Cout, Lg), jnp.float32),
        grid=(N,),
        in_specs=in_specs,
        out_specs=pl.BlockSpec((1, Cout, Lg), lambda n: (n, 0, 0)),
        scratch_shapes=[pltpu.VMEM((Cout, Lg + 2 * Wpg + 2), jnp.float32)],
        compiler_params=pltpu.CompilerParams(
            dimension_semantics=("parallel",)),
    )(*args)

    # drop the stride-junk columns and return NHWC
    out = out_flat.reshape(N, Cout, Hg, Wpg)[:, :, :, :Wg]
    return jnp.transpose(out, (0, 2, 3, 1))


# ---------------------------------------------------------------------------
# Pure-JAX reference (lax convs, f32) for the correctness check
# ---------------------------------------------------------------------------
def _ref_conv(x, w_oihw, b, pad):
    w = jnp.transpose(w_oihw, (2, 3, 1, 0))
    y = lax.conv_general_dilated(x, w, (1, 1), [(pad, pad), (pad, pad)],
                                 dimension_numbers=("NHWC", "HWIO", "NHWC"),
                                 precision=lax.Precision.HIGHEST)
    return y + b[None, None, None, :]


def _ref_convT(x, w_iohw, b, stride, pad):
    K = w_iohw.shape[-1]
    w = jnp.transpose(w_iohw, (2, 3, 0, 1))[::-1, ::-1]
    p = K - 1 - pad
    y = lax.conv_general_dilated(x, w, (1, 1), [(p, p), (p, p)],
                                 lhs_dilation=(stride, stride),
                                 dimension_numbers=("NHWC", "HWIO", "NHWC"),
                                 precision=lax.Precision.HIGHEST)
    return y + b[None, None, None, :]


def reference_forward(g, x, t, p):
    temb = jax.nn.relu(jnp.dot(t, p["t_w"], precision=lax.Precision.HIGHEST) + p["t_b"])
    h = jax.nn.relu(_ref_conv(g, p["c1_w"], p["c1_b"], 1)) + temb[:, None, None, :]
    h = jax.nn.relu(_ref_conv(h, p["c2_w"], p["c2_b"], 1))
    g1 = _ref_convT(h, p["wg_w"], p["wg_b"], 1, 1)
    x1 = _ref_convT(x, p["wx_w"], p["wx_b"], 2, 1)
    psi = jax.nn.sigmoid(_ref_convT(jax.nn.relu(g1 + x1), p["psi_w"], p["psi_b"], 1, 1))
    return x1 * psi


# ---------------------------------------------------------------------------
def init_params(key, in_ch, out_ch, x_ch, tdim):
    ks = jax.random.split(key, 12)
    s = 0.1
    f32 = jnp.float32
    return {
        "t_w":  s * jax.random.normal(ks[0],  (tdim, out_ch), f32),
        "t_b":  s * jax.random.normal(ks[1],  (out_ch,), f32),
        "c1_w": s * jax.random.normal(ks[2],  (out_ch, in_ch, 3, 3), f32),
        "c1_b": s * jax.random.normal(ks[3],  (out_ch,), f32),
        "c2_w": s * jax.random.normal(ks[4],  (out_ch, out_ch, 3, 3), f32),
        "c2_b": s * jax.random.normal(ks[5],  (out_ch,), f32),
        "wg_w": s * jax.random.normal(ks[6],  (out_ch, out_ch, 3, 3), f32),
        "wg_b": s * jax.random.normal(ks[7],  (out_ch,), f32),
        "wx_w": s * jax.random.normal(ks[8],  (x_ch, out_ch, 4, 4), f32),
        "wx_b": s * jax.random.normal(ks[9],  (out_ch,), f32),
        "psi_w": s * jax.random.normal(ks[10], (out_ch, out_ch, 3, 3), f32),
        "psi_b": s * jax.random.normal(ks[11], (out_ch,), f32),
    }


if __name__ == "__main__":
    key = jax.random.PRNGKey(0)
    N = 2
    in_ch, out_ch, x_ch, tdim = 4, 8, 4, 32
    Hg = Wg = 16          # spatial size of g (gating signal)
    Hx = Wx = 8           # spatial size of x (upsampled 2x to match g)

    k_g, k_x, k_t, k_p = jax.random.split(key, 4)
    g = jax.random.normal(k_g, (N, Hg, Wg, in_ch), jnp.float32)   # NHWC
    x = jax.random.normal(k_x, (N, Hx, Wx, x_ch), jnp.float32)    # NHWC
    t = jax.random.normal(k_t, (N, tdim), jnp.float32)
    params = init_params(k_p, in_ch, out_ch, x_ch, tdim)

    fwd = jax.jit(attention_upsampling_block)
    out = jax.block_until_ready(fwd(g, x, t, params))
    assert out.shape == (N, Hg, Wg, out_ch), out.shape

    ref = jax.block_until_ready(reference_forward(g, x, t, params))
    max_err = float(jnp.max(jnp.abs(out - ref)))
    # kernel uses bf16 MXU inputs (f32 accumulate); reference is f32 HIGHEST
    assert max_err < 3e-2, f"mismatch vs reference: max abs err = {max_err}"

    print("KERNEL_OK")
</pallas_src>

<mosaic_0001>
module attributes {stable_mosaic.version = 11 : i64} {
  func.func @_fused_block_kernel(%arg0: i32, %arg1: memref<1x36x288xbf16, #tpu.memory_space<vmem>>, %arg2: memref<1x64x288xbf16, #tpu.memory_space<vmem>>, %arg3: memref<1x1x32xf32, #tpu.memory_space<vmem>>, %arg4: memref<1x288xf32, #tpu.memory_space<vmem>>, %arg5: memref<8x32xf32, #tpu.memory_space<vmem>>, %arg6: memref<8x1xf32, #tpu.memory_space<vmem>>, %arg7: memref<8x36xbf16, #tpu.memory_space<vmem>>, %arg8: memref<8x1xf32, #tpu.memory_space<vmem>>, %arg9: memref<8x72xbf16, #tpu.memory_space<vmem>>, %arg10: memref<8x1xf32, #tpu.memory_space<vmem>>, %arg11: memref<8x72xbf16, #tpu.memory_space<vmem>>, %arg12: memref<8x1xf32, #tpu.memory_space<vmem>>, %arg13: memref<8x64xbf16, #tpu.memory_space<vmem>>, %arg14: memref<8x1xf32, #tpu.memory_space<vmem>>, %arg15: memref<8x72xbf16, #tpu.memory_space<vmem>>, %arg16: memref<8x1xf32, #tpu.memory_space<vmem>>, %arg17: memref<1x8x288xf32, #tpu.memory_space<vmem>>, %arg18: memref<8x326xf32, #tpu.memory_space<vmem>>) attributes {dimension_semantics = [#tpu.dimension_semantics<parallel>], iteration_bounds = array<i64: 2>, scalar_prefetch = 0 : i64, scratch_operands = 1 : i64, tpu.core_type = #tpu.core_type<tc>, window_params = [{transform_indices = @transform_0, window_bounds = array<i64: 1, 36, 288>}, {transform_indices = @transform_1, window_bounds = array<i64: 1, 64, 288>}, {transform_indices = @transform_2, window_bounds = array<i64: 1, 1, 32>}, {pipeline_mode = #tpu.pipeline_mode<synchronous>, transform_indices = @transform_3, window_bounds = array<i64: 1, 288>}, {pipeline_mode = #tpu.pipeline_mode<synchronous>, transform_indices = @transform_4, window_bounds = array<i64: 8, 32>}, {pipeline_mode = #tpu.pipeline_mode<synchronous>, transform_indices = @transform_5, window_bounds = array<i64: 8, 1>}, {pipeline_mode = #tpu.pipeline_mode<synchronous>, transform_indices = @transform_6, window_bounds = array<i64: 8, 36>}, {pipeline_mode = #tpu.pipeline_mode<synchronous>, transform_indices = @transform_7, window_bounds = array<i64: 8, 1>}, {pipeline_mode = #tpu.pipeline_mode<synchronous>, transform_indices = @transform_8, window_bounds = array<i64: 8, 72>}, {pipeline_mode = #tpu.pipeline_mode<synchronous>, transform_indices = @transform_9, window_bounds = array<i64: 8, 1>}, {pipeline_mode = #tpu.pipeline_mode<synchronous>, transform_indices = @transform_10, window_bounds = array<i64: 8, 72>}, {pipeline_mode = #tpu.pipeline_mode<synchronous>, transform_indices = @transform_11, window_bounds = array<i64: 8, 1>}, {pipeline_mode = #tpu.pipeline_mode<synchronous>, transform_indices = @transform_12, window_bounds = array<i64: 8, 64>}, {pipeline_mode = #tpu.pipeline_mode<synchronous>, transform_indices = @transform_13, window_bounds = array<i64: 8, 1>}, {pipeline_mode = #tpu.pipeline_mode<synchronous>, transform_indices = @transform_14, window_bounds = array<i64: 8, 72>}, {pipeline_mode = #tpu.pipeline_mode<synchronous>, transform_indices = @transform_15, window_bounds = array<i64: 8, 1>}, {transform_indices = @transform_16, window_bounds = array<i64: 1, 8, 288>}]} {
    %c0 = arith.constant 0 : index
    %c0_0 = arith.constant 0 : index
    %0 = vector.load %arg4[%c0, %c0_0] : memref<1x288xf32, #tpu.memory_space<vmem>>, vector<1x288xf32>
    %cst = arith.constant 0.000000e+00 : f32
    %1 = vector.broadcast %cst : f32 to vector<8x326xf32>
    %c0_1 = arith.constant 0 : index
    %c0_2 = arith.constant 0 : index
    %2 = vector.load %arg18[%c0_1, %c0_2] : memref<8x326xf32, #tpu.memory_space<vmem>>, vector<8x326xf32>
    tpu.vector_store %arg18[%c0_1, %c0_2], %1 {strides = array<i32>} : memref<8x326xf32, #tpu.memory_space<vmem>>, vector<8x326xf32>,
    %c0_3 = arith.constant 0 : index
    %c0_4 = arith.constant 0 : index
    %3 = vector.load %arg13[%c0_3, %c0_4] : memref<8x64xbf16, #tpu.memory_space<vmem>>, vector<8x64xbf16>
    %c0_5 = arith.constant 0 : index
    %c0_6 = arith.constant 0 : index
    %c0_7 = arith.constant 0 : index
    %4 = vector.load %arg2[%c0_5, %c0_6, %c0_7] : memref<1x64x288xbf16, #tpu.memory_space<vmem>>, vector<1x64x288xbf16>
    %5 = vector.shape_cast %4 : vector<1x64x288xbf16> to vector<64x288xbf16>
    %cst_8 = arith.constant dense<0.000000e+00> : vector<8x288xf32>
    %6 = tpu.matmul %3, %5, %cst_8 {dimension_numbers = #tpu.dot_dimension_numbers<[1], [0], [0], [1], [0, 0, 1, 1], [], []>} : vector<8x64xbf16>, vector<64x288xbf16>, vector<8x288xf32> -> vector<8x288xf32>
    %c0_9 = arith.constant 0 : index
    %c0_10 = arith.constant 0 : index
    %7 = vector.load %arg14[%c0_9, %c0_10] : memref<8x1xf32, #tpu.memory_space<vmem>>, vector<8x1xf32>
    %8 = vector.broadcast %7 : vector<8x1xf32> to vector<8x288xf32>
    %9 = arith.addf %6, %8 : vector<8x288xf32>
    %c0_11 = arith.constant 0 : index
    %c0_12 = arith.constant 0 : index
    %10 = vector.load %arg5[%c0_11, %c0_12] : memref<8x32xf32, #tpu.memory_space<vmem>>, vector<8x32xf32>
    %c0_13 = arith.constant 0 : index
    %c0_14 = arith.constant 0 : index
    %c0_15 = arith.constant 0 : index
    %11 = vector.load %arg3[%c0_13, %c0_14, %c0_15] : memref<1x1x32xf32, #tpu.memory_space<vmem>>, vector<1x1x32xf32>
    %12 = vector.shape_cast %11 : vector<1x1x32xf32> to vector<1x32xf32>
    %13 = vector.broadcast %12 : vector<1x32xf32> to vector<8x32xf32>
    %14 = arith.mulf %10, %13 : vector<8x32xf32>
    %cst_16 = arith.constant dense<0.000000e+00> : vector<8xf32>
    %15 = vector.multi_reduction <add>, %14, %cst_16 [1] : vector<8x32xf32> to vector<8xf32>
    %16 = vector.shape_cast %15 : vector<8xf32> to vector<8x1xf32>
    %c0_17 = arith.constant 0 : index
    %c0_18 = arith.constant 0 : index
    %17 = vector.load %arg6[%c0_17, %c0_18] : memref<8x1xf32, #tpu.memory_space<vmem>>, vector<8x1xf32>
    %18 = arith.addf %16, %17 : vector<8x1xf32>
    %cst_19 = arith.constant 0.000000e+00 : f32
    %19 = vector.broadcast %cst_19 : f32 to vector<8x1xf32>
    %20 = arith.maximumf %18, %19 : vector<8x1xf32>
    %c0_20 = arith.constant 0 : index
    %c0_21 = arith.constant 0 : index
    %21 = vector.load %arg7[%c0_20, %c0_21] : memref<8x36xbf16, #tpu.memory_space<vmem>>, vector<8x36xbf16>
    %c0_22 = arith.constant 0 : index
    %c0_23 = arith.constant 0 : index
    %c0_24 = arith.constant 0 : index
    %22 = vector.load %arg1[%c0_22, %c0_23, %c0_24] : memref<1x36x288xbf16, #tpu.memory_space<vmem>>, vector<1x36x288xbf16>
    %23 = vector.shape_cast %22 : vector<1x36x288xbf16> to vector<36x288xbf16>
    %cst_25 = arith.constant dense<0.000000e+00> : vector<8x288xf32>
    %24 = tpu.matmul %21, %23, %cst_25 {dimension_numbers = #tpu.dot_dimension_numbers<[1], [0], [0], [1], [0, 0, 1, 1], [], []>} : vector<8x36xbf16>, vector<36x288xbf16>, vector<8x288xf32> -> vector<8x288xf32>
    %c0_26 = arith.constant 0 : index
    %c0_27 = arith.constant 0 : index
    %25 = vector.load %arg8[%c0_26, %c0_27] : memref<8x1xf32, #tpu.memory_space<vmem>>, vector<8x1xf32>
    %26 = vector.broadcast %25 : vector<8x1xf32> to vector<8x288xf32>
    %27 = arith.addf %24, %26 : vector<8x288xf32>
    %cst_28 = arith.constant 0.000000e+00 : f32
    %28 = vector.broadcast %cst_28 : f32 to vector<8x288xf32>
    %29 = arith.maximumf %27, %28 : vector<8x288xf32>
    %30 = vector.broadcast %20 : vector<8x1xf32> to vector<8x288xf32>
    %31 = arith.addf %29, %30 : vector<8x288xf32>
    %32 = vector.broadcast %0 : vector<1x288xf32> to vector<8x288xf32>
    %33 = arith.mulf %31, %32 : vector<8x288xf32>
    %c0_29 = arith.constant 0 : index
    %c19 = arith.constant 19 : index
    %34 = vector.load %arg18[%c0_29, %c19] : memref<8x326xf32, #tpu.memory_space<vmem>>, vector<8x288xf32>
    tpu.vector_store %arg18[%c0_29, %c19], %33 {strides = array<i32>} : memref<8x326xf32, #tpu.memory_space<vmem>>, vector<8x288xf32>,
    %c0_30 = arith.constant 0 : index
    %c0_31 = arith.constant 0 : index
    %35 = vector.load %arg9[%c0_30, %c0_31] : memref<8x72xbf16, #tpu.memory_space<vmem>>, vector<8x72xbf16>
    %c0_32 = arith.constant 0 : index
    %c0_33 = arith.constant 0 : index
    %36 = vector.load %arg18[%c0_32, %c0_33] : memref<8x326xf32, #tpu.memory_space<vmem>>, vector<8x288xf32>
    %c0_34 = arith.constant 0 : index
    %c1 = arith.constant 1 : index
    %37 = vector.load %arg18[%c0_34, %c1] : memref<8x326xf32, #tpu.memory_space<vmem>>, vector<8x288xf32>
    %c0_35 = arith.constant 0 : index
    %c2 = arith.constant 2 : index
    %38 = vector.load %arg18[%c0_35, %c2] : memref<8x326xf32, #tpu.memory_space<vmem>>, vector<8x288xf32>
    %c0_36 = arith.constant 0 : index
    %c18 = arith.constant 18 : index
    %39 = vector.load %arg18[%c0_36, %c18] : memref<8x326xf32, #tpu.memory_space<vmem>>, vector<8x288xf32>
    %c0_37 = arith.constant 0 : index
    %c19_38 = arith.constant 19 : index
    %40 = vector.load %arg18[%c0_37, %c19_38] : memref<8x326xf32, #tpu.memory_space<vmem>>, vector<8x288xf32>
    %c0_39 = arith.constant 0 : index
    %c20 = arith.constant 20 : index
    %41 = vector.load %arg18[%c0_39, %c20] : memref<8x326xf32, #tpu.memory_space<vmem>>, vector<8x288xf32>
    %c0_40 = arith.constant 0 : index
    %c36 = arith.constant 36 : index
    %42 = vector.load %arg18[%c0_40, %c36] : memref<8x326xf32, #tpu.memory_space<vmem>>, vector<8x288xf32>
    %c0_41 = arith.constant 0 : index
    %c37 = arith.constant 37 : index
    %43 = vector.load %arg18[%c0_41, %c37] : memref<8x326xf32, #tpu.memory_space<vmem>>, vector<8x288xf32>
    %c0_42 = arith.constant 0 : index
    %c38 = arith.constant 38 : index
    %44 = vector.load %arg18[%c0_42, %c38] : memref<8x326xf32, #tpu.memory_space<vmem>>, vector<8x288xf32>
    %45 = tpu.concatenate %36, %37, %38, %39, %40, %41, %42, %43, %44 in 0 : vector<8x288xf32>, vector<8x288xf32>, vector<8x288xf32>, vector<8x288xf32>, vector<8x288xf32>, vector<8x288xf32>, vector<8x288xf32>, vector<8x288xf32>, vector<8x288xf32> -> vector<72x288xf32>
    %46 = arith.truncf %45 : vector<72x288xf32> to vector<72x288xbf16>
    %cst_43 = arith.constant dense<0.000000e+00> : vector<8x288xf32>
    %47 = tpu.matmul %35, %46, %cst_43 {dimension_numbers = #tpu.dot_dimension_numbers<[1], [0], [0], [1], [0, 0, 1, 1], [], []>} : vector<8x72xbf16>, vector<72x288xbf16>, vector<8x288xf32> -> vector<8x288xf32>
    %c0_44 = arith.constant 0 : index
    %c0_45 = arith.constant 0 : index
    %48 = vector.load %arg10[%c0_44, %c0_45] : memref<8x1xf32, #tpu.memory_space<vmem>>, vector<8x1xf32>
    %49 = vector.broadcast %48 : vector<8x1xf32> to vector<8x288xf32>
    %50 = arith.addf %47, %49 : vector<8x288xf32>
    %cst_46 = arith.constant 0.000000e+00 : f32
    %51 = vector.broadcast %cst_46 : f32 to vector<8x288xf32>
    %52 = arith.maximumf %50, %51 : vector<8x288xf32>
    %53 = vector.broadcast %0 : vector<1x288xf32> to vector<8x288xf32>
    %54 = arith.mulf %52, %53 : vector<8x288xf32>
    %c0_47 = arith.constant 0 : index
    %c19_48 = arith.constant 19 : index
    %55 = vector.load %arg18[%c0_47, %c19_48] : memref<8x326xf32, #tpu.memory_space<vmem>>, vector<8x288xf32>
    tpu.vector_store %arg18[%c0_47, %c19_48], %54 {strides = array<i32>} : memref<8x326xf32, #tpu.memory_space<vmem>>, vector<8x288xf32>,
    %c0_49 = arith.constant 0 : index
    %c0_50 = arith.constant 0 : index
    %56 = vector.load %arg11[%c0_49, %c0_50] : memref<8x72xbf16, #tpu.memory_space<vmem>>, vector<8x72xbf16>
    %c0_51 = arith.constant 0 : index
    %c0_52 = arith.constant 0 : index
    %57 = vector.load %arg18[%c0_51, %c0_52] : memref<8x326xf32, #tpu.memory_space<vmem>>, vector<8x288xf32>
    %c0_53 = arith.constant 0 : index
    %c1_54 = arith.constant 1 : index
    %58 = vector.load %arg18[%c0_53, %c1_54] : memref<8x326xf32, #tpu.memory_space<vmem>>, vector<8x288xf32>
    %c0_55 = arith.constant 0 : index
    %c2_56 = arith.constant 2 : index
    %59 = vector.load %arg18[%c0_55, %c2_56] : memref<8x326xf32, #tpu.memory_space<vmem>>, vector<8x288xf32>
    %c0_57 = arith.constant 0 : index
    %c18_58 = arith.constant 18 : index
    %60 = vector.load %arg18[%c0_57, %c18_58] : memref<8x326xf32, #tpu.memory_space<vmem>>, vector<8x288xf32>
    %c0_59 = arith.constant 0 : index
    %c19_60 = arith.constant 19 : index
    %61 = vector.load %arg18[%c0_59, %c19_60] : memref<8x326xf32, #tpu.memory_space<vmem>>, vector<8x288xf32>
    %c0_61 = arith.constant 0 : index
    %c20_62 = arith.constant 20 : index
    %62 = vector.load %arg18[%c0_61, %c20_62] : memref<8x326xf32, #tpu.memory_space<vmem>>, vector<8x288xf32>
    %c0_63 = arith.constant 0 : index
    %c36_64 = arith.constant 36 : index
    %63 = vector.load %arg18[%c0_63, %c36_64] : memref<8x326xf32, #tpu.memory_space<vmem>>, vector<8x288xf32>
    %c0_65 = arith.constant 0 : index
    %c37_66 = arith.constant 37 : index
    %64 = vector.load %arg18[%c0_65, %c37_66] : memref<8x326xf32, #tpu.memory_space<vmem>>, vector<8x288xf32>
    %c0_67 = arith.constant 0 : index
    %c38_68 = arith.constant 38 : index
    %65 = vector.load %arg18[%c0_67, %c38_68] : memref<8x326xf32, #tpu.memory_space<vmem>>, vector<8x288xf32>
    %66 = tpu.concatenate %57, %58, %59, %60, %61, %62, %63, %64, %65 in 0 : vector<8x288xf32>, vector<8x288xf32>, vector<8x288xf32>, vector<8x288xf32>, vector<8x288xf32>, vector<8x288xf32>, vector<8x288xf32>, vector<8x288xf32>, vector<8x288xf32> -> vector<72x288xf32>
    %67 = arith.truncf %66 : vector<72x288xf32> to vector<72x288xbf16>
    %cst_69 = arith.constant dense<0.000000e+00> : vector<8x288xf32>
    %68 = tpu.matmul %56, %67, %cst_69 {dimension_numbers = #tpu.dot_dimension_numbers<[1], [0], [0], [1], [0, 0, 1, 1], [], []>} : vector<8x72xbf16>, vector<72x288xbf16>, vector<8x288xf32> -> vector<8x288xf32>
    %c0_70 = arith.constant 0 : index
    %c0_71 = arith.constant 0 : index
    %69 = vector.load %arg12[%c0_70, %c0_71] : memref<8x1xf32, #tpu.memory_space<vmem>>, vector<8x1xf32>
    %70 = vector.broadcast %69 : vector<8x1xf32> to vector<8x288xf32>
    %71 = arith.addf %68, %70 : vector<8x288xf32>
    %72 = arith.addf %71, %9 : vector<8x288xf32>
    %cst_72 = arith.constant 0.000000e+00 : f32
    %73 = vector.broadcast %cst_72 : f32 to vector<8x288xf32>
    %74 = arith.maximumf %72, %73 : vector<8x288xf32>
    %75 = vector.broadcast %0 : vector<1x288xf32> to vector<8x288xf32>
    %76 = arith.mulf %74, %75 : vector<8x288xf32>
    %c0_73 = arith.constant 0 : index
    %c19_74 = arith.constant 19 : index
    %77 = vector.load %arg18[%c0_73, %c19_74] : memref<8x326xf32, #tpu.memory_space<vmem>>, vector<8x288xf32>
    tpu.vector_store %arg18[%c0_73, %c19_74], %76 {strides = array<i32>} : memref<8x326xf32, #tpu.memory_space<vmem>>, vector<8x288xf32>,
    %c0_75 = arith.constant 0 : index
    %c0_76 = arith.constant 0 : index
    %78 = vector.load %arg15[%c0_75, %c0_76] : memref<8x72xbf16, #tpu.memory_space<vmem>>, vector<8x72xbf16>
    %c0_77 = arith.constant 0 : index
    %c0_78 = arith.constant 0 : index
    %79 = vector.load %arg18[%c0_77, %c0_78] : memref<8x326xf32, #tpu.memory_space<vmem>>, vector<8x288xf32>
    %c0_79 = arith.constant 0 : index
    %c1_80 = arith.constant 1 : index
    %80 = vector.load %arg18[%c0_79, %c1_80] : memref<8x326xf32, #tpu.memory_space<vmem>>, vector<8x288xf32>
    %c0_81 = arith.constant 0 : index
    %c2_82 = arith.constant 2 : index
    %81 = vector.load %arg18[%c0_81, %c2_82] : memref<8x326xf32, #tpu.memory_space<vmem>>, vector<8x288xf32>
    %c0_83 = arith.constant 0 : index
    %c18_84 = arith.constant 18 : index
    %82 = vector.load %arg18[%c0_83, %c18_84] : memref<8x326xf32, #tpu.memory_space<vmem>>, vector<8x288xf32>
    %c0_85 = arith.constant 0 : index
    %c19_86 = arith.constant 19 : index
    %83 = vector.load %arg18[%c0_85, %c19_86] : memref<8x326xf32, #tpu.memory_space<vmem>>, vector<8x288xf32>
    %c0_87 = arith.constant 0 : index
    %c20_88 = arith.constant 20 : index
    %84 = vector.load %arg18[%c0_87, %c20_88] : memref<8x326xf32, #tpu.memory_space<vmem>>, vector<8x288xf32>
    %c0_89 = arith.constant 0 : index
    %c36_90 = arith.constant 36 : index
    %85 = vector.load %arg18[%c0_89, %c36_90] : memref<8x326xf32, #tpu.memory_space<vmem>>, vector<8x288xf32>
    %c0_91 = arith.constant 0 : index
    %c37_92 = arith.constant 37 : index
    %86 = vector.load %arg18[%c0_91, %c37_92] : memref<8x326xf32, #tpu.memory_space<vmem>>, vector<8x288xf32>
    %c0_93 = arith.constant 0 : index
    %c38_94 = arith.constant 38 : index
    %87 = vector.load %arg18[%c0_93, %c38_94] : memref<8x326xf32, #tpu.memory_space<vmem>>, vector<8x288xf32>
    %88 = tpu.concatenate %79, %80, %81, %82, %83, %84, %85, %86, %87 in 0 : vector<8x288xf32>, vector<8x288xf32>, vector<8x288xf32>, vector<8x288xf32>, vector<8x288xf32>, vector<8x288xf32>, vector<8x288xf32>, vector<8x288xf32>, vector<8x288xf32> -> vector<72x288xf32>
    %89 = arith.truncf %88 : vector<72x288xf32> to vector<72x288xbf16>
    %cst_95 = arith.constant dense<0.000000e+00> : vector<8x288xf32>
    %90 = tpu.matmul %78, %89, %cst_95 {dimension_numbers = #tpu.dot_dimension_numbers<[1], [0], [0], [1], [0, 0, 1, 1], [], []>} : vector<8x72xbf16>, vector<72x288xbf16>, vector<8x288xf32> -> vector<8x288xf32>
    %c0_96 = arith.constant 0 : index
    %c0_97 = arith.constant 0 : index
    %91 = vector.load %arg16[%c0_96, %c0_97] : memref<8x1xf32, #tpu.memory_space<vmem>>, vector<8x1xf32>
    %92 = vector.broadcast %91 : vector<8x1xf32> to vector<8x288xf32>
    %93 = arith.addf %90, %92 : vector<8x288xf32>
    %94 = arith.negf %93 : vector<8x288xf32>
    %95 = math.exp %94 : vector<8x288xf32>
    %cst_98 = arith.constant 1.000000e+00 : f32
    %96 = vector.broadcast %cst_98 : f32 to vector<8x288xf32>
    %97 = arith.addf %96, %95 : vector<8x288xf32>
    %98 = arith.divf %96, %97 : vector<8x288xf32>
    %99 = arith.mulf %9, %98 : vector<8x288xf32>
    %c0_99 = arith.constant 0 : index
    %c0_100 = arith.constant 0 : index
    %c0_101 = arith.constant 0 : index
    %100 = vector.load %arg17[%c0_99, %c0_100, %c0_101] : memref<1x8x288xf32, #tpu.memory_space<vmem>>, vector<1x8x288xf32>
    %101 = vector.shape_cast %100 : vector<1x8x288xf32> to vector<8x288xf32>
    %102 = vector.shape_cast %99 : vector<8x288xf32> to vector<1x8x288xf32>
    tpu.vector_store %arg17[%c0_99, %c0_100, %c0_101], %102 {strides = array<i32>} : memref<1x8x288xf32, #tpu.memory_space<vmem>>, vector<1x8x288xf32>,
    return
  }
  func.func @transform_0(%arg0: i32) -> (i32, i32, i32) {
    %c0_i32 = arith.constant 0 : i32
    %c0_i32_0 = arith.constant 0 : i32
    %c0_i32_1 = arith.constant 0 : i32
    return %arg0, %c0_i32, %c0_i32_0 : i32, i32, i32
  }
  func.func @transform_1(%arg0: i32) -> (i32, i32, i32) {
    %c0_i32 = arith.constant 0 : i32
    %c0_i32_0 = arith.constant 0 : i32
    %c0_i32_1 = arith.constant 0 : i32
    return %arg0, %c0_i32, %c0_i32_0 : i32, i32, i32
  }
  func.func @transform_2(%arg0: i32) -> (i32, i32, i32) {
    %c0_i32 = arith.constant 0 : i32
    %c0_i32_0 = arith.constant 0 : i32
    %c0_i32_1 = arith.constant 0 : i32
    return %arg0, %c0_i32, %c0_i32_0 : i32, i32, i32
  }
  func.func @transform_3(%arg0: i32) -> (i32, i32) {
    %c0_i32 = arith.constant 0 : i32
    %c0_i32_0 = arith.constant 0 : i32
    %c0_i32_1 = arith.constant 0 : i32
    return %c0_i32, %c0_i32_0 : i32, i32
  }
  func.func @transform_4(%arg0: i32) -> (i32, i32) {
    %c0_i32 = arith.constant 0 : i32
    %c0_i32_0 = arith.constant 0 : i32
    %c0_i32_1 = arith.constant 0 : i32
    return %c0_i32, %c0_i32_0 : i32, i32
  }
  func.func @transform_5(%arg0: i32) -> (i32, i32) {
    %c0_i32 = arith.constant 0 : i32
    %c0_i32_0 = arith.constant 0 : i32
    %c0_i32_1 = arith.constant 0 : i32
    return %c0_i32, %c0_i32_0 : i32, i32
  }
  func.func @transform_6(%arg0: i32) -> (i32, i32) {
    %c0_i32 = arith.constant 0 : i32
    %c0_i32_0 = arith.constant 0 : i32
    %c0_i32_1 = arith.constant 0 : i32
    return %c0_i32, %c0_i32_0 : i32, i32
  }
  func.func @transform_7(%arg0: i32) -> (i32, i32) {
    %c0_i32 = arith.constant 0 : i32
    %c0_i32_0 = arith.constant 0 : i32
    %c0_i32_1 = arith.constant 0 : i32
    return %c0_i32, %c0_i32_0 : i32, i32
  }
  func.func @transform_8(%arg0: i32) -> (i32, i32) {
    %c0_i32 = arith.constant 0 : i32
    %c0_i32_0 = arith.constant 0 : i32
    %c0_i32_1 = arith.constant 0 : i32
    return %c0_i32, %c0_i32_0 : i32, i32
  }
  func.func @transform_9(%arg0: i32) -> (i32, i32) {
    %c0_i32 = arith.constant 0 : i32
    %c0_i32_0 = arith.constant 0 : i32
    %c0_i32_1 = arith.constant 0 : i32
    return %c0_i32, %c0_i32_0 : i32, i32
  }
  func.func @transform_10(%arg0: i32) -> (i32, i32) {
    %c0_i32 = arith.constant 0 : i32
    %c0_i32_0 = arith.constant 0 : i32
    %c0_i32_1 = arith.constant 0 : i32
    return %c0_i32, %c0_i32_0 : i32, i32
  }
  func.func @transform_11(%arg0: i32) -> (i32, i32) {
    %c0_i32 = arith.constant 0 : i32
    %c0_i32_0 = arith.constant 0 : i32
    %c0_i32_1 = arith.constant 0 : i32
    return %c0_i32, %c0_i32_0 : i32, i32
  }
  func.func @transform_12(%arg0: i32) -> (i32, i32) {
    %c0_i32 = arith.constant 0 : i32
    %c0_i32_0 = arith.constant 0 : i32
    %c0_i32_1 = arith.constant 0 : i32
    return %c0_i32, %c0_i32_0 : i32, i32
  }
  func.func @transform_13(%arg0: i32) -> (i32, i32) {
    %c0_i32 = arith.constant 0 : i32
    %c0_i32_0 = arith.constant 0 : i32
    %c0_i32_1 = arith.constant 0 : i32
    return %c0_i32, %c0_i32_0 : i32, i32
  }
  func.func @transform_14(%arg0: i32) -> (i32, i32) {
    %c0_i32 = arith.constant 0 : i32
    %c0_i32_0 = arith.constant 0 : i32
    %c0_i32_1 = arith.constant 0 : i32
    return %c0_i32, %c0_i32_0 : i32, i32
  }
  func.func @transform_15(%arg0: i32) -> (i32, i32) {
    %c0_i32 = arith.constant 0 : i32
    %c0_i32_0 = arith.constant 0 : i32
    %c0_i32_1 = arith.constant 0 : i32
    return %c0_i32, %c0_i32_0 : i32, i32
  }
  func.func @transform_16(%arg0: i32) -> (i32, i32, i32) {
    %c0_i32 = arith.constant 0 : i32
    %c0_i32_0 = arith.constant 0 : i32
    %c0_i32_1 = arith.constant 0 : i32
    return %arg0, %c0_i32, %c0_i32_0 : i32, i32, i32
  }
}

</mosaic_0001>

<bundles_post_ra>
// kernel: attention_upsampling_block.1
= control target key start
LH: loop header
LB: loop body
LE: loop exit
PB: predicated region body
PF: predicated region fallthrough
CT: control target
= control target key end

     0   :  { %s2167_s21 = smov 0   ;;  %s2519_s0 = inlined_call_operand.vmem [shape: bf16[2,36,288], index: 0, kind: input, shape index: {}]   ;;  %s2520_s1 = inlined_call_operand.vmem [shape: bf16[2,64,288], index: 1, kind: input, shape index: {}]   ;;  %s2521_s2 = inlined_call_operand.vmem [shape: f32[2,1,32], index: 2, kind: input, shape index: {}]   ;;  %s2522_s3 = inlined_call_operand.vmem [shape: f32[1,288], index: 3, kind: input, shape index: {}]   ;;  %s2523_s4 = inlined_call_operand.vmem [shape: f32[8,32], index: 4, kind: input, shape index: {}]   ;;  %s2524_s5 = inlined_call_operand.vmem [shape: f32[8,1], index: 5, kind: input, shape index: {}]   ;;  %s2525_s6 = inlined_call_operand.vmem [shape: bf16[8,36], index: 6, kind: input, shape index: {}]   ;;  %s2526_s7 = inlined_call_operand.vmem [shape: f32[8,1], index: 7, kind: input, shape index: {}]   ;;  %s2527_s8 = inlined_call_operand.vmem [shape: bf16[8,72], index: 8, kind: input, shape index: {}]   ;;  %s2528_s9 = inlined_call_operand.vmem [shape: f32[8,1], index: 9, kind: input, shape index: {}]   ;;  %s2529_s10 = inlined_call_operand.vmem [shape: bf16[8,72], index: 10, kind: input, shape index: {}]   ;;  %s2530_s11 = inlined_call_operand.vmem [shape: f32[8,1], index: 11, kind: input, shape index: {}]   ;;  %s2531_s12 = inlined_call_operand.vmem [shape: bf16[8,64], index: 12, kind: input, shape index: {}]   ;;  %s2532_s13 = inlined_call_operand.vmem [shape: f32[8,1], index: 13, kind: input, shape index: {}]   ;;  %s2533_s14 = inlined_call_operand.vmem [shape: bf16[8,72], index: 14, kind: input, shape index: {}]   ;;  %s2534_s15 = inlined_call_operand.vmem [shape: f32[8,1], index: 15, kind: input, shape index: {}]   ;;  %s2535_s16 = inlined_call_operand.vmem [shape: f32[2,8,288], index: 16, kind: output, shape index: {}]  }
   0x1   :  { %2536 = sst [smem:[#allocation3_spill]] %s2519_s0 }
   0x2 LB: > { %s1738_s22 = sadd.s32 4294967295, %s2068_s21   ;;  %p1742_p0 = scmp.ge.s32.totalorder %s2068_s21, 1  ;;  %s2068_s21 = sphi %s2167_s21, %s26_s21  }
   0x3   : > { %p480_p1 = scmp.lt.s32.totalorder %s2068_s21, 3 }
   0x5   : > { %p481_p2 = pnand %p1742_p0, %p480_p1 }
   0x6   : > { %p538_p3 = scmp.lt.s32.totalorder (!%p481_p2), %s1738_s22, 1  ;;  %s2537_s17 = sld [smem:[#allocation3_spill]] (!%p481_p2) }
   0x7   : > { %484 = sbr.rel (%p481_p2) target bundleno = 1758 (0x6de), region = 84  ;;  %s2073_s19 = smov (!%p481_p2), 19  }
   0x8   : > { %s2074_s20 = smov (!%p481_p2), 109   ;;  %s2076_s24 = smov (!%p481_p2), 126  }
   0x9   : > { %s2077_s25 = smov (!%p481_p2), 91   ;;  %s2078_s26 = smov (!%p481_p2), 108  }
   0xa   : > { %s2081_s0 = smov (!%p481_p2), 110  }
   0xc   : > { %v2070_v0 = vmov 0.0   ;;  %v2071_v1 = vmov 0   ;;  %s2539_s22 = smov (!%p538_p3, %s1738_s22), 1  ;;  %vm2072_vm0 = vmmov 0   ;;  %v734_v2 = vld [vmem:[%s2523_s4] sm:$0xff]  ;;  %vm743_vm1 = vcmask 261120  }
   0xd   : > { %1814 = vmatprep.subr.bf16.mxu1 %v2070_v0  ;;  %558 = vst [vmem:[#allocation2] sm:$0xff] %v2070_v0  ;;  %685 = vmatprep.mubr.bf16.mxu0 %v2071_v1  ;;  %s550_s27 = scalar_lea.vmem %s2521_s2, %s2539_s22  ;;  %s1878_s28 = smul.u32 60, %s2539_s22  ;;  %vm811_vm2 = vcmask 1041408   ;;  %v562_v22 = vld [vmem:[%s2531_s12] sm:$0xf]  ;;  %vm649_vm3 = vcmask 523264   ;;  %v914_v53 = vlaneseq }
   0xe   : > { %1822 = vmatprep.mubr.msk.bf16.mxu1 %vm2072_vm0, %v2070_v0  ;;  %1901 = vset.pattern.permute.xlu0 %v2071_v1  ;;  %v1760_v3 = vld [vmem:[%s550_s27] ss:$0 sm:$0xff]  ;;  %s1879_s29 = smul.u32 96, %s2539_s22  ;;  %vm807_vm4 = vcmask 293888   ;;  %vm560_vm5 = vcmask 572416   ;;  %vm947_vm6 = vcmask 1047704  }
   0xf   : > { %1902 = vset.pattern.permute.xlu1 %v2071_v1  ;;  %v742_v4 = vmul.f32 %v1760_v3, %v734_v2  ;;  %s2196_s18 = scalar_lea.vmem %s2537_s17, %s1878_s28  ;;  %v761_v27 = vld [vmem:[%s2526_s7] sm:$0xff]  ;;  %v915_v55 = vshrl.u32 %v914_v53, 7  ;;  %561 = vst.msk [vmem:[#allocation2 + $0x10] sm:$0xff] %vm560_vm5, %v2070_v0  ;;  %vm950_vm7 = vcmask 416768   ;;  %vm941_vm8 = vcmask 154624   ;;  %s2079_s27 = smov 90  }
  0x10   : > { %s547_s23 = scalar_lea.vmem %s2520_s1, %s1879_s29  ;;  %v759_v16 = vld [vmem:[%s2196_s18 + $0x30] sm:$0x33]  ;;  %v2044_v21 = vld [vmem:[%s2196_s18 + $0x38] ss:$0 sps:$4 sm:$0x33]   ;;  %v747_v33 = vld [vmem:[%s2524_s5] sm:$0xff] }
  0x11   : > { %v744_v5 = vsel %vm743_vm1, %v742_v4, 0.0  ;;  %v2023_v6 = vld [vmem:[%s547_s23 + $0x4c] ss:$12 sps:$4 sm:$0xff]   ;;  %v2025_v7 = vld [vmem:[%s547_s23 + $0x48] ss:$12 sps:$4 sm:$0xff]   ;;  %v1768_v18 = vcombine.high %v759_v16, %v759_v16  ;;  %v1767_v19 = vcombine.low %v759_v16, %v759_v16  ;;  %v819_v25 = vsel %vm811_vm2, %v2044_v21, 0 }
  0x12   : > { %745 = vadd.xlane.f32.xlu0 %v744_v5  ;;  %661 = vmatprep.subr.bf16.mxu0 %v2023_v6  ;;  %v2026_v8 = vld [vmem:[%s547_s23 + $0x34] ss:$12 sps:$4 sm:$0xff]   ;;  %v2028_v9 = vld [vmem:[%s547_s23 + $0x30] ss:$12 sps:$4 sm:$0xff]   ;;  %v2033_v12 = vld [vmem:[%s547_s23 + $0x38] ss:$12 sps:$4 sm:$0xff]  }
  0x13   : > { %662 = vmatpush1.bf16.msra.mxu0 %v2025_v7  ;;  %v2029_v10 = vld [vmem:[%s547_s23 + $0x50] ss:$12 sps:$4 sm:$0xff]   ;;  %v2032_v13 = vld [vmem:[%s547_s23 + $0x18] ss:$12 sps:$4 sm:$0xff]   ;;  %v2037_v15 = vld [vmem:[%s547_s23 + $0x20] ss:$12 sps:$4 sm:$0xff]  }
  0x14   : > { %663 = vmatprep.subr.bf16.mxu0 %v2026_v8  ;;  %v2030_v11 = vld [vmem:[%s547_s23 + $0x1c] ss:$12 sps:$4 sm:$0xff]   ;;  %1815 = vmatpush3.bf16.msra.mxu1 %v2029_v10  ;;  %v2034_v14 = vld [vmem:[%s547_s23 + $0x4] ss:$12 sps:$4 sm:$0xff]   ;;  %v2036_v17 = vld [vmem:[%s547_s23] ss:$12 sps:$4 sm:$0xff]  }
  0x15   : > { %1816 = vmatprep.subr.bf16.mxu1 %v2070_v0  ;;  %v2040_v20 = vld [vmem:[%s547_s23 + $0x8] ss:$12 sps:$4 sm:$0xff]   ;;  %v813_v23 = vsel %vm811_vm2, %v1767_v19, 0  ;;  %v2041_v26 = vld [vmem:[%s2196_s18 + $0x18] ss:$12 sps:$4 sm:$0xff]   ;;  %v916_v58 = vsub.s32 0, %v915_v55 }
  0x16   : > { %v2043_v24 = vld [vmem:[%s2196_s18 + $0x1c] ss:$12 sps:$4 sm:$0xff]   ;;  %v2047_v28 = vld [vmem:[%s2196_s18 + $0x4] ss:$12 sps:$4 sm:$0xff]   ;;  %v2048_v29 = vld [vmem:[%s2196_s18 + $0x20] ss:$12 sps:$4 sm:$0xff]  }
  0x17   : > { %664 = vmatpush1.bf16.msra.mxu0 %v2028_v9  ;;  %v2045_v30 = vld [vmem:[%s2196_s18] ss:$12 sps:$4 sm:$0xff]   ;;  %v2049_v31 = vld [vmem:[%s2196_s18 + $0x8] ss:$12 sps:$4 sm:$0xff]   ;;  %v920_v2 = vsub.s32 1, %v915_v55  ;;  %v924_v5 = vsub.s32 2, %v915_v55 }
  0x18   : > { %665 = vmatprep.subr.bf16.mxu0 %v2030_v11  ;;  %1817 = vmatpush3.bf16.msra.mxu1 %v2033_v12  ;;  %v750_v32 = vld [vmem:[%s2525_s6] sm:$0xf]  ;;  %s2075_s23 = smov 92   ;;  %s2080_s28 = smov 127   ;;  %vm1049_vm9 = vcmask 736256   ;;  %vm1080_vm10 = vcmask 1043456  }
  0x19   : > { %1818 = vmatprep.subr.bf16.mxu1 %v2070_v0  ;;  %v557_v59 = vld [vmem:[%s2522_s3] sm:$0x7]  ;;  %vm1025_vm11 = vcmask 752640   ;;  %vm1037_vm12 = vcmask 744448   ;;  %vm1001_vm13 = vcmask 891904   ;;  %vm1013_vm14 = vcmask 883712  }
  0x1a   : > { %v2245_v63 = vrot.slane %v557_v59, %v916_v58  ;;  %v2248_v9 = vrot.slane %v557_v59, %v920_v2  ;;  %v2252_v12 = vrot.slane %v557_v59, %v924_v5  ;;  %vm977_vm15 = vcmask 1031168  }
  0x1b   : > { %666 = vmatpush1.bf16.msra.mxu0 %v2032_v13 }
  0x1c   : > { %667 = vmatprep.subr.bf16.mxu0 %v2034_v14  ;;  %1819 = vmatpush3.bf16.msra.mxu1 %v2037_v15 }
  0x1d   : > { %1820 = vmatprep.subr.bf16.mxu1 %v2070_v0 }
  0x1f   : > { %668 = vmatpush1.bf16.msra.mxu0 %v2036_v17 }
  0x20   : > { %1770 = vmatprep.subr.msk.bf16.mxu0 %vm811_vm2, %v1768_v18  ;;  %1821 = vmatpush3.bf16.msra.mxu1 %v2040_v20  ;;  %vm989_vm2 = vcmask 900096  }
  0x21   : > { %1826 = vmatprep.subr.bf16.mxu1 %v2070_v0 }
  0x22   : > { %1758 = vmatmul.mubr.msk.bf16.vlgmr.msra.gmra.mxu0 %vm649_vm3, %v562_v22 }
  0x23   : > { %832 = vmatpush1.bf16.msra.mxu0 %v813_v23  ;;  %853 = vmatprep.mubr.bf16.mxu0 %v2071_v1  ;;  %v1070_v23 = vld [vmem:[%s2528_s9] sm:$0xff] }
  0x24   : > { %833 = vmatprep.subr.bf16.mxu0 %v2043_v24  ;;  %1823 = vmatmul.mubr.msk.bf16.vlgmr.msra.gmra.mxu1 %vm649_vm3, %v562_v22  ;;  %vm965_vm3 = vcmask 1039360  }
  0x25   : > { %1827 = vmatpush3.bf16.msra.mxu1 %v819_v25  ;;  %1832 = vmatprep.mubr.msk.bf16.mxu1 %vm2072_vm0, %v2070_v0 }
  0x26   : > { %1828 = vmatprep.subr.bf16.mxu1 %v2070_v0 }
  0x27   : > { %834 = vmatpush1.bf16.msra.mxu0 %v2041_v26 }
  0x28   : > { %764 = vperm.xlu0 %1901, %v761_v27   ;;  %835 = vmatprep.subr.bf16.mxu0 %v2047_v28 }
  0x29   : > { %1829 = vmatpush3.bf16.msra.mxu1 %v2048_v29 }
  0x2a   : > { %1830 = vmatprep.subr.bf16.mxu1 %v2070_v0 }
  0x2b   : > { %836 = vmatpush1.bf16.msra.mxu0 %v2045_v30 }
  0x2d   : > { %1831 = vmatpush3.bf16.msra.mxu1 %v2049_v31 }
  0x2e   : > { %1771 = vmatmul.mubr.msk.bf16.vlgmr.msra.gmra.mxu0 %vm807_vm4, %v750_v32  ;;  %1836 = vmatprep.subr.bf16.mxu1 %v2070_v0 }
  0x2f   : > { %1122 = vmatprep.mubr.bf16.mxu0 %v2071_v1 }
  0x30   : > { %1833 = vmatmul.mubr.msk.bf16.vlgmr.msra.gmra.mxu1 %vm807_vm4, %v750_v32  ;;  %vm1076_vm4 = vcmask 588800  }
  0x31   : > { %1846 = vmatprep.mubr.msk.bf16.mxu1 %vm2072_vm0, %v2070_v0 }
  0x9b   : > { %v746_v34 = vpop.xlane.xlu0 %745 }
  0x9c   : > { %v748_v35 = vadd.f32 %v747_v33, %v746_v34 }
  0x9e   : > { %v749_v36 = vmax.f32 %v748_v35, 0.0 }
  0xa0   : > { %907 = vperm.xlu1 %1902, %v749_v36  }
  0xa3   : > { %v765_v54 = vpop.permute.xlu0 %764 }
  0xe2   : > { %v2235_v37 = vpop.f32.mrf.mxu0 }
  0xe4   : > { %v2237_v38 = vpop.f32.mrf.mxu0  ;;  %v2239_v39 = vpop.f32.mrf.mxu1 }
  0xe6   : > { %v691_v40 = vpop.f32.mrf.mxu0  ;;  %v1824_v41 = vpop.f32.mrf.mxu1 }
  0xe8   : > { %v692_v42 = vpop.f32.mrf.mxu0  ;;  %v731_v43 = vpop.f32.mrf.mxu1 }
  0xea   : > { %v1825_v44 = vpop.f32.mrf.mxu1 }
  0xee   : > { %v855_v45 = vpop.f32.mrf.mxu0 }
  0xef   : > { %v856_v56 = vadd.f32 %v855_v45, %v765_v54 }
  0xf0   : > { %v857_v46 = vpop.f32.mrf.mxu0  ;;  %v896_v47 = vpop.f32.mrf.mxu1 }
  0xf1   : > { %v858_v57 = vadd.f32 %v857_v46, %v765_v54  ;;  %v902_v60 = vmax.f32 %v856_v56, 0.0  ;;  %v897_v62 = vadd.f32 %v896_v47, %v765_v54 }
  0xf2   : > { %v859_v48 = vpop.f32.mrf.mxu0  ;;  %v1834_v49 = vpop.f32.mrf.mxu1 }
  0xf3   : > { %v903_v61 = vmax.f32 %v858_v57, 0.0  ;;  %v904_v6 = vmax.f32 %v897_v62, 0.0 }
  0xf4   : > { %v860_v50 = vpop.f32.mrf.mxu0  ;;  %v899_v51 = vpop.f32.mrf.mxu1 }
  0xf6   : > { %v1835_v52 = vpop.f32.mrf.mxu1 }
 0x11b   : > { %v908_v3 = vpop.permute.xlu1 %907 }
 0x11c   : > { %v910_v4 = vadd.f32 %v908_v3, %v902_v60  ;;  %v911_v7 = vadd.f32 %v908_v3, %v903_v61  ;;  %v912_v10 = vadd.f32 %v908_v3, %v904_v6 }
 0x11e   : > { %v929_v8 = vmul.f32 %v2245_v63, %v910_v4  ;;  %v930_v11 = vmul.f32 %v2248_v9, %v911_v7  ;;  %v931_v13 = vmul.f32 %v2252_v12, %v912_v10 }
 0x120   : > { %935 = vrot.lane.b32.xlu1 %v929_v8, %s2073_s19 }
 0x124   : > { %937 = vrot.lane.b32.xlu1 %v930_v11, %s2073_s19 }
 0x128   : > { %939 = vrot.lane.b32.xlu1 %v931_v13, %s2073_s19 }
 0x192   : > { %v936_v14 = vpop.permute.xlu1 %935 }
 0x193   : > { %948 = vst.msk [vmem:[#allocation2] sm:$0xff] %vm947_vm6, %v936_v14 }
 0x196   : > { %v938_v15 = vpop.permute.xlu1 %937 }
 0x197   : > { %v2271_v19 = vsel %vm941_vm8, %v936_v14, %v938_v15 }
 0x19a   : > { %v940_v16 = vpop.permute.xlu1 %939  ;;  %v2258_v17 = vld [vmem:[#allocation2] sm:$0xff] }
 0x19b   : > { %v943_v18 = vsel %vm941_vm8, %v938_v15, %v940_v16  ;;  %995 = vrot.lane.b32.xlu0 %v2258_v17, %s2074_s20  ;;  %1019 = vrot.lane.b32.xlu1 %v2258_v17, %s2075_s23  ;;  %v1903_v22 = vpack.i.bf16 %v2271_v19, %v2258_v17 }
 0x19c   : > { %951 = vst.msk [vmem:[#allocation2 + $0x10] sm:$0xff] %vm950_vm7, %v943_v18 }
 0x19f   : > { %971 = vrot.lane.b32.xlu0 %v2258_v17, %s2076_s24  ;;  %1031 = vrot.lane.b32.xlu1 %v2258_v17, %s2077_s25 }
 0x1a3   : > { %1007 = vrot.lane.b32.xlu1 %v2258_v17, %s2078_s26  ;;  %v2275_v20 = vld [vmem:[#allocation2 + $0x10] sm:$0xff] }
 0x1a4   : > { %v1928_v21 = vpack.i.bf16 %v2275_v20, %v2271_v19 }
 0x1a6   : > { %1929 = vrot.lane.b32.xlu0 %v1928_v21, %s2076_s24 }
 0x1a7   : > { %1904 = vrot.lane.b32.xlu1 %v1903_v22, %s2079_s27 }
 0x1aa   : > { %1939 = vrot.lane.b32.xlu0 %v1928_v21, %s2080_s28 }
 0x1ab   : > { %1047 = vrot.lane.b32.xlu1 %v2275_v20, %s2079_s27 }
 0x1ae   : > { %1073 = vperm.xlu0 %1901, %v1070_v23  }
 0x1af   : > { %1909 = vrot.lane.b32.xlu1 %v1928_v21, %s2075_s23 }
 0x1b3   : > { %1914 = vrot.lane.b32.xlu1 %v1928_v21, %s2077_s25 }
 0x1b7   : > { %1919 = vrot.lane.b32.xlu1 %v1928_v21, %s2074_s20 }
 0x1bb   : > { %1924 = vrot.lane.b32.xlu1 %v1928_v21, %s2078_s26 }
 0x1bf   : > { %1934 = vrot.lane.b32.xlu1 %v1928_v21, %s2081_s0 }
 0x1c3   : > { %983 = vrot.lane.b32.xlu1 %v2258_v17, %s2081_s0 }
 0x1c7   : > { %959 = vrot.lane.b32.xlu1 %v2258_v17, %s2080_s28 }
 0x20d   : > { %v1020_v24 = vpop.permute.xlu1 %1019  ;;  %v996_v33 = vpop.permute.xlu0 %995 }
 0x211   : > { %v1032_v25 = vpop.permute.xlu1 %1031  ;;  %v972_v44 = vpop.permute.xlu0 %971 }
 0x215   : > { %v1008_v26 = vpop.permute.xlu1 %1007 }
 0x218   : > { %v1930_v50 = vpop.permute.xlu0 %1929 }
 0x219   : > { %v1905_v27 = vpop.permute.xlu1 %1904  ;;  %v1932_v3 = vunpack.i.h.bf16 %v1930_v50  ;;  %v1931_v4 = vunpack.i.l.bf16 %v1930_v50 }
 0x21a   : > { %v1907_v28 = vunpack.i.h.bf16 %v1905_v27  ;;  %v1906_v29 = vunpack.i.l.bf16 %v1905_v27 }
 0x21b   : > { %v979_v23 = vsel %vm977_vm15, %v1931_v4, %v1932_v3 }
 0x21c   : > { %v1050_v30 = vsel %vm1049_vm9, %v1906_v29, %v1907_v28  ;;  %v1940_v61 = vpop.permute.xlu0 %1939 }
 0x21d   : > { %v1048_v31 = vpop.permute.xlu1 %1047  ;;  %v1067_v32 = vpack.c.bf16 %v1050_v30, %v1050_v30  ;;  %v1942_v11 = vunpack.i.h.bf16 %v1940_v61  ;;  %v1941_v13 = vunpack.i.l.bf16 %v1940_v61 }
 0x21e   : > { %v1051_v34 = vsel %vm1049_vm9, %v1907_v28, %v1048_v31  ;;  %v1069_v35 = vpack.c.bf16 %v1048_v31, %v1048_v31  ;;  %v978_v28 = vsel %vm977_vm15, %v972_v44, %v1931_v4  ;;  %v1304_v4 = vld [vmem:[%s2530_s11] sm:$0xff] }
 0x21f   : > { %v1068_v36 = vpack.c.bf16 %v1051_v34, %v1051_v34  ;;  %v1082_v42 = vsel %vm1080_vm10, %v1067_v32, 0  ;;  %v967_v27 = vsel %vm965_vm3, %v1941_v13, %v1942_v11  ;;  %v1057_v31 = vpack.c.bf16 %v1942_v11, %v2275_v20 }
 0x220   : > { %v1088_v40 = vsel %vm1080_vm10, %v1069_v35, 0  ;;  %v1056_v32 = vpack.c.bf16 %v967_v27, %v2271_v19  ;;  %v952_v35 = vld [vmem:[%s2527_s8] sm:$0xf] }
 0x221   : > { %1837 = vmatpush3.bf16.msra.mxu1 %v1088_v40  ;;  %v1910_v41 = vpop.permute.xlu1 %1909  ;;  %1773 = vmatprep.subr.msk.bf16.mxu0 %vm1080_vm10, %v1068_v36 }
 0x222   : > { %1097 = vmatpush1.bf16.msra.mxu0 %v1082_v42  ;;  %1838 = vmatprep.subr.bf16.mxu1 %v2070_v0  ;;  %v1911_v43 = vunpack.i.l.bf16 %v1910_v41  ;;  %v1912_v45 = vunpack.i.h.bf16 %v1910_v41 }
 0x224   : > { %v1026_v49 = vsel %vm1025_vm11, %v1020_v24, %v1911_v43  ;;  %v1027_v53 = vsel %vm1025_vm11, %v1911_v43, %v1912_v45 }
 0x225   : > { %v1915_v46 = vpop.permute.xlu1 %1914 }
 0x226   : > { %v1917_v47 = vunpack.i.h.bf16 %v1915_v46  ;;  %v1916_v48 = vunpack.i.l.bf16 %v1915_v46 }
 0x228   : > { %v1038_v51 = vsel %vm1037_vm12, %v1032_v25, %v1916_v48  ;;  %v1066_v52 = vpack.c.bf16 %v1917_v47, %v1912_v45  ;;  %v1039_v54 = vsel %vm1037_vm12, %v1916_v48, %v1917_v47 }
 0x229   : > { %v1064_v55 = vpack.c.bf16 %v1038_v51, %v1026_v49  ;;  %v1920_v56 = vpop.permute.xlu1 %1919  ;;  %v1065_v57 = vpack.c.bf16 %v1039_v54, %v1027_v53  ;;  %v1074_v40 = vpop.permute.xlu0 %1073 }
 0x22a   : > { %1839 = vmatpush3.bf16.msra.mxu1 %v1066_v52  ;;  %v1921_v58 = vunpack.i.l.bf16 %v1920_v56  ;;  %v1922_v59 = vunpack.i.h.bf16 %v1920_v56 }
 0x22b   : > { %1098 = vmatprep.subr.bf16.mxu0 %v1065_v57  ;;  %1840 = vmatprep.subr.bf16.mxu1 %v2070_v0 }
 0x22c   : > { %1099 = vmatpush1.bf16.msra.mxu0 %v1064_v55  ;;  %v1002_v5 = vsel %vm1001_vm13, %v996_v33, %v1921_v58  ;;  %v1003_v8 = vsel %vm1001_vm13, %v1921_v58, %v1922_v59 }
 0x22d   : > { %v1925_v60 = vpop.permute.xlu1 %1924 }
 0x22e   : > { %v1927_v62 = vunpack.i.h.bf16 %v1925_v60  ;;  %v1926_v2 = vunpack.i.l.bf16 %v1925_v60 }
 0x230   : > { %v1014_v6 = vsel %vm1013_vm14, %v1008_v26, %v1926_v2  ;;  %v1063_v7 = vpack.c.bf16 %v1927_v62, %v1922_v59  ;;  %v1015_v10 = vsel %vm1013_vm14, %v1926_v2, %v1927_v62 }
 0x231   : > { %v1061_v14 = vpack.c.bf16 %v1014_v6, %v1002_v5  ;;  %v1935_v15 = vpop.permute.xlu1 %1934  ;;  %v1062_v16 = vpack.c.bf16 %v1015_v10, %v1003_v8 }
 0x232   : > { %v1937_v18 = vunpack.i.h.bf16 %v1935_v15  ;;  %v1936_v21 = vunpack.i.l.bf16 %v1935_v15  ;;  %1841 = vmatpush3.bf16.msra.mxu1 %v1063_v7 }
 0x233   : > { %1100 = vmatprep.subr.bf16.mxu0 %v1062_v16  ;;  %1842 = vmatprep.subr.bf16.mxu1 %v2070_v0 }
 0x234   : > { %v1060_v22 = vpack.c.bf16 %v1937_v18, %v1932_v3  ;;  %1101 = vmatpush1.bf16.msra.mxu0 %v1061_v14  ;;  %v991_v24 = vsel %vm989_vm2, %v1936_v21, %v1937_v18  ;;  %v579_v3 = vld [vmem:[%s2532_s13] sm:$0xff] }
 0x235   : > { %v984_v25 = vpop.permute.xlu1 %983  ;;  %v1059_v26 = vpack.c.bf16 %v991_v24, %v979_v23 }
 0x236   : > { %v990_v29 = vsel %vm989_vm2, %v984_v25, %v1936_v21  ;;  %1843 = vmatpush3.bf16.msra.mxu1 %v1060_v22 }
 0x237   : > { %v1058_v30 = vpack.c.bf16 %v990_v29, %v978_v28  ;;  %1102 = vmatprep.subr.bf16.mxu0 %v1059_v26  ;;  %1844 = vmatprep.subr.bf16.mxu1 %v2070_v0 }
 0x239   : > { %v960_v33 = vpop.permute.xlu1 %959  ;;  %1103 = vmatpush1.bf16.msra.mxu0 %v1058_v30 }
 0x23a   : > { %v966_v34 = vsel %vm965_vm3, %v960_v33, %v1941_v13  ;;  %1104 = vmatprep.subr.bf16.mxu0 %v1056_v32  ;;  %1845 = vmatpush3.bf16.msra.mxu1 %v1057_v31 }
 0x23b   : > { %v1055_v36 = vpack.c.bf16 %v966_v34, %v2258_v17  ;;  %1850 = vmatprep.subr.bf16.mxu1 %v2070_v0 }
 0x23d   : > { %1105 = vmatpush1.bf16.msra.mxu0 %v1055_v36  ;;  %1847 = vmatmul.mubr.msk.bf16.vlgmr.msra.gmra.mxu1 %vm1076_vm4, %v952_v35 }
 0x23e   : > { %1860 = vmatprep.mubr.msk.bf16.mxu1 %vm2072_vm0, %v2070_v0 }
 0x240   : > { %1774 = vmatmul.mubr.msk.bf16.vlgmr.msra.gmra.mxu0 %vm1076_vm4, %v952_v35 }
 0x241   : > { %1354 = vmatprep.mubr.bf16.mxu0 %v2071_v1 }
 0x2fd   : > { %v1165_v19 = vpop.f32.mrf.mxu1 }
 0x2fe   : > { %v1166_v42 = vadd.f32 %v1165_v19, %v1074_v40 }
 0x2ff   : > { %v1848_v20 = vpop.f32.mrf.mxu1 }
 0x300   : > { %v1124_v41 = vpop.f32.mrf.mxu0  ;;  %v1173_v49 = vmax.f32 %v1166_v42, 0.0 }
 0x301   : > { %v1125_v43 = vadd.f32 %v1124_v41, %v1074_v40  ;;  %v1168_v44 = vpop.f32.mrf.mxu1 }
 0x302   : > { %v1126_v17 = vpop.f32.mrf.mxu0  ;;  %v1176_v54 = vmul.f32 %v1173_v49, %v2252_v12 }
 0x303   : > { %v1171_v45 = vmax.f32 %v1125_v43, 0.0  ;;  %v1127_v46 = vadd.f32 %v1126_v17, %v1074_v40  ;;  %v1849_v47 = vpop.f32.mrf.mxu1 }
 0x304   : > { %v1128_v48 = vpop.f32.mrf.mxu0 }
 0x305   : > { %v1174_v50 = vmul.f32 %v1171_v45, %v2245_v63  ;;  %v1172_v51 = vmax.f32 %v1127_v46, 0.0 }
 0x306   : > { %v1129_v52 = vpop.f32.mrf.mxu0 }
 0x307   : > { %v1175_v53 = vmul.f32 %v1172_v51, %v2248_v9  ;;  %1180 = vrot.lane.b32.xlu1 %v1174_v50, %s2073_s19 }
 0x309   : > { %1182 = vrot.lane.b32.xlu0 %v1175_v53, %s2073_s19 }
 0x30b   : > { %1184 = vrot.lane.b32.xlu1 %v1176_v54, %s2073_s19 }
 0x379   : > { %v1181_v55 = vpop.permute.xlu1 %1180 }
 0x37a   : > { %1191 = vst.msk [vmem:[#allocation2] sm:$0xff] %vm947_vm6, %v1181_v55 }
 0x37b   : > { %v1183_v56 = vpop.permute.xlu0 %1182 }
 0x37c   : > { %v2359_v61 = vsel %vm941_vm8, %v1181_v55, %v1183_v56 }
 0x37d   : > { %v1185_v57 = vpop.permute.xlu1 %1184 }
 0x37e   : > { %v1187_v58 = vsel %vm941_vm8, %v1183_v56, %v1185_v57 }
 0x37f   : > { %1193 = vst.msk [vmem:[#allocation2 + $0x10] sm:$0xff] %vm950_vm7, %v1187_v58 }
 0x381   : > { %v2342_v59 = vld [vmem:[#allocation2] sm:$0xff] }
 0x382   : > { %1267 = vrot.lane.b32.xlu1 %v2342_v59, %s2077_s25  ;;  %1256 = vrot.lane.b32.xlu0 %v2342_v59, %s2075_s23  ;;  %v1943_v62 = vpack.i.bf16 %v2359_v61, %v2342_v59 }
 0x386   : > { %1245 = vrot.lane.b32.xlu1 %v2342_v59, %s2078_s26  ;;  %1234 = vrot.lane.b32.xlu0 %v2342_v59, %s2074_s20  ;;  %v2352_v60 = vld [vmem:[#allocation2 + $0x10] sm:$0xff] }
 0x387   : > { %v1953_v2 = vpack.i.bf16 %v2352_v60, %v2359_v61 }
 0x38a   : > { %1212 = vrot.lane.b32.xlu0 %v2342_v59, %s2076_s24  ;;  %1282 = vrot.lane.b32.xlu1 %v2352_v60, %s2079_s27 }
 0x38e   : > { %1944 = vrot.lane.b32.xlu0 %v1943_v62, %s2079_s27  ;;  %1954 = vrot.lane.b32.xlu1 %v1953_v2, %s2077_s25 }
 0x392   : > { %1949 = vrot.lane.b32.xlu0 %v1953_v2, %s2075_s23  ;;  %1964 = vrot.lane.b32.xlu1 %v1953_v2, %s2078_s26 }
 0x396   : > { %1959 = vrot.lane.b32.xlu0 %v1953_v2, %s2074_s20  ;;  %1974 = vrot.lane.b32.xlu1 %v1953_v2, %s2081_s0 }
 0x39a   : > { %1969 = vrot.lane.b32.xlu0 %v1953_v2, %s2076_s24  ;;  %1223 = vrot.lane.b32.xlu1 %v2342_v59, %s2081_s0 }
 0x39e   : > { %1979 = vrot.lane.b32.xlu0 %v1953_v2, %s2080_s28  ;;  %1201 = vrot.lane.b32.xlu1 %v2342_v59, %s2080_s28 }
 0x3a2   : > { %582 = vperm.xlu0 %1901, %v579_v3   ;;  %1307 = vperm.xlu1 %1902, %v1304_v4  }
 0x3f4   : > { %v1257_v5 = vpop.permute.xlu0 %1256  ;;  %v1268_v6 = vpop.permute.xlu1 %1267 }
 0x3f8   : > { %v1235_v7 = vpop.permute.xlu0 %1234  ;;  %v1246_v8 = vpop.permute.xlu1 %1245 }
 0x3fc   : > { %v1213_v10 = vpop.permute.xlu0 %1212  ;;  %v1283_v11 = vpop.permute.xlu1 %1282 }
 0x3fd   : > { %v1303_v13 = vpack.c.bf16 %v1283_v11, %v1283_v11 }
 0x3ff   : > { %v1320_v14 = vsel %vm1080_vm10, %v1303_v13, 0 }
 0x400   : > { %v1945_v15 = vpop.permute.xlu0 %1944  ;;  %1851 = vmatpush3.bf16.msra.mxu1 %v1320_v14  ;;  %v1955_v16 = vpop.permute.xlu1 %1954 }
 0x401   : > { %v1947_v18 = vunpack.i.h.bf16 %v1945_v15  ;;  %v1946_v21 = vunpack.i.l.bf16 %v1945_v15  ;;  %1852 = vmatprep.subr.bf16.mxu1 %v2070_v0  ;;  %v1957_v22 = vunpack.i.h.bf16 %v1955_v16  ;;  %v1956_v23 = vunpack.i.l.bf16 %v1955_v16 }
 0x403   : > { %v1285_v24 = vsel %vm1049_vm9, %v1947_v18, %v1283_v11  ;;  %v1284_v25 = vsel %vm1049_vm9, %v1946_v21, %v1947_v18  ;;  %v1273_v32 = vsel %vm1037_vm12, %v1268_v6, %v1956_v23  ;;  %v1274_v35 = vsel %vm1037_vm12, %v1956_v23, %v1957_v22 }
 0x404   : > { %v1302_v26 = vpack.c.bf16 %v1285_v24, %v1285_v24  ;;  %v1950_v27 = vpop.permute.xlu0 %1949  ;;  %v1965_v28 = vpop.permute.xlu1 %1964  ;;  %v1301_v29 = vpack.c.bf16 %v1284_v25, %v1284_v25 }
 0x405   : > { %v1952_v30 = vunpack.i.h.bf16 %v1950_v27  ;;  %v1951_v31 = vunpack.i.l.bf16 %v1950_v27  ;;  %v1966_v33 = vunpack.i.l.bf16 %v1965_v28  ;;  %v1967_v20 = vunpack.i.h.bf16 %v1965_v28 }
 0x406   : > { %1776 = vmatprep.subr.msk.bf16.mxu0 %vm1080_vm10, %v1302_v26  ;;  %v1314_v34 = vsel %vm1080_vm10, %v1301_v29, 0 }
 0x407   : > { %v1262_v36 = vsel %vm1025_vm11, %v1257_v5, %v1951_v31  ;;  %v1300_v19 = vpack.c.bf16 %v1957_v22, %v1952_v30  ;;  %1329 = vmatpush1.bf16.msra.mxu0 %v1314_v34  ;;  %v1263_v40 = vsel %vm1025_vm11, %v1951_v31, %v1952_v30  ;;  %v1251_v46 = vsel %vm1013_vm14, %v1246_v8, %v1966_v33  ;;  %v1194_v22 = vld [vmem:[%s2529_s10] sm:$0xf] }
 0x408   : > { %v1298_v41 = vpack.c.bf16 %v1273_v32, %v1262_v36  ;;  %v1960_v42 = vpop.permute.xlu0 %1959  ;;  %v1975_v43 = vpop.permute.xlu1 %1974  ;;  %v1299_v44 = vpack.c.bf16 %v1274_v35, %v1263_v40  ;;  %v1252_v52 = vsel %vm1013_vm14, %v1966_v33, %v1967_v20 }
 0x409   : > { %v1962_v17 = vunpack.i.h.bf16 %v1960_v42  ;;  %v1961_v45 = vunpack.i.l.bf16 %v1960_v42  ;;  %1853 = vmatpush3.bf16.msra.mxu1 %v1300_v19  ;;  %v1977_v47 = vunpack.i.h.bf16 %v1975_v43  ;;  %v1976_v48 = vunpack.i.l.bf16 %v1975_v43 }
 0x40a   : > { %1330 = vmatprep.subr.bf16.mxu0 %v1299_v44  ;;  %1854 = vmatprep.subr.bf16.mxu1 %v2070_v0 }
 0x40b   : > { %v1240_v49 = vsel %vm1001_vm13, %v1235_v7, %v1961_v45  ;;  %v1297_v50 = vpack.c.bf16 %v1967_v20, %v1962_v17  ;;  %1331 = vmatpush1.bf16.msra.mxu0 %v1298_v41  ;;  %v1241_v51 = vsel %vm1001_vm13, %v1961_v45, %v1962_v17  ;;  %v1230_v62 = vsel %vm989_vm2, %v1976_v48, %v1977_v47 }
 0x40c   : > { %v1295_v53 = vpack.c.bf16 %v1251_v46, %v1240_v49  ;;  %v1970_v54 = vpop.permute.xlu0 %1969  ;;  %v1224_v55 = vpop.permute.xlu1 %1223  ;;  %v1296_v56 = vpack.c.bf16 %v1252_v52, %v1241_v51 }
 0x40d   : > { %v1972_v57 = vunpack.i.h.bf16 %v1970_v54  ;;  %v1971_v58 = vunpack.i.l.bf16 %v1970_v54  ;;  %1855 = vmatpush3.bf16.msra.mxu1 %v1297_v50  ;;  %v1229_v4 = vsel %vm989_vm2, %v1224_v55, %v1976_v48 }
 0x40e   : > { %1332 = vmatprep.subr.bf16.mxu0 %v1296_v56  ;;  %1856 = vmatprep.subr.bf16.mxu1 %v2070_v0 }
 0x40f   : > { %v1294_v2 = vpack.c.bf16 %v1977_v47, %v1972_v57  ;;  %v1218_v3 = vsel %vm977_vm15, %v1213_v10, %v1971_v58  ;;  %1333 = vmatpush1.bf16.msra.mxu0 %v1295_v53  ;;  %v1219_v5 = vsel %vm977_vm15, %v1971_v58, %v1972_v57  ;;  %v1539_v47 = vld [vmem:[%s2534_s15] sm:$0xff] }
 0x410   : > { %v1292_v6 = vpack.c.bf16 %v1229_v4, %v1218_v3  ;;  %v1980_v7 = vpop.permute.xlu0 %1979  ;;  %v1293_v8 = vpack.c.bf16 %v1230_v62, %v1219_v5  ;;  %v1202_v14 = vpop.permute.xlu1 %1201 }
 0x411   : > { %v1982_v11 = vunpack.i.h.bf16 %v1980_v7  ;;  %v1981_v13 = vunpack.i.l.bf16 %v1980_v7  ;;  %1857 = vmatpush3.bf16.msra.mxu1 %v1294_v2 }
 0x412   : > { %1334 = vmatprep.subr.bf16.mxu0 %v1293_v8  ;;  %1858 = vmatprep.subr.bf16.mxu1 %v2070_v0 }
 0x413   : > { %v1291_v15 = vpack.c.bf16 %v1982_v11, %v2352_v60  ;;  %v1207_v16 = vsel %vm965_vm3, %v1202_v14, %v1981_v13  ;;  %1335 = vmatpush1.bf16.msra.mxu0 %v1292_v6  ;;  %v1208_v10 = vsel %vm965_vm3, %v1981_v13, %v1982_v11 }
 0x414   : > { %v1289_v18 = vpack.c.bf16 %v1207_v16, %v2342_v59  ;;  %v1290_v21 = vpack.c.bf16 %v1208_v10, %v2359_v61 }
 0x415   : > { %1859 = vmatpush3.bf16.msra.mxu1 %v1291_v15 }
 0x416   : > { %1336 = vmatprep.subr.bf16.mxu0 %v1290_v21  ;;  %1864 = vmatprep.subr.bf16.mxu1 %v2070_v0 }
 0x417   : > { %1337 = vmatpush1.bf16.msra.mxu0 %v1289_v18 }
 0x418   : > { %1861 = vmatmul.mubr.msk.bf16.vlgmr.msra.gmra.mxu1 %vm1076_vm4, %v1194_v22 }
 0x419   : > { %1874 = vmatprep.mubr.msk.bf16.mxu1 %vm2072_vm0, %v2070_v0 }
 0x41a   : > { %1777 = vmatmul.mubr.msk.bf16.vlgmr.msra.gmra.mxu0 %vm1076_vm4, %v1194_v22 }
 0x41b   : > { %1589 = vmatprep.mubr.bf16.mxu0 %v2071_v1 }
 0x41d   : > { %v583_v59 = vpop.permute.xlu0 %582  ;;  %v1308_v60 = vpop.permute.xlu1 %1307 }
 0x41e   : > { %v2419_v26 = vadd.f32 %v2235_v37, %v583_v59  ;;  %v2422_v27 = vadd.f32 %v2239_v39, %v583_v59  ;;  %v2425_v31 = vadd.f32 %v2237_v38, %v583_v59 }
 0x4d8   : > { %v1397_v61 = vpop.f32.mrf.mxu1 }
 0x4d9   : > { %v1398_v23 = vadd.f32 %v1397_v61, %v1308_v60 }
 0x4da   : > { %v1356_v24 = vpop.f32.mrf.mxu0  ;;  %v1862_v25 = vpop.f32.mrf.mxu1 }
 0x4db   : > { %v1357_v28 = vadd.f32 %v1356_v24, %v1308_v60  ;;  %v1405_v1 = vadd.f32 %v1398_v23, %v2422_v27 }
 0x4dc   : > { %v1358_v29 = vpop.f32.mrf.mxu0  ;;  %v1400_v30 = vpop.f32.mrf.mxu1 }
 0x4dd   : > { %v1403_v32 = vadd.f32 %v1357_v28, %v2419_v26  ;;  %v1359_v33 = vadd.f32 %v1358_v29, %v1308_v60  ;;  %v1408_v20 = vmax.f32 %v1405_v1, 0.0 }
 0x4de   : > { %v1360_v34 = vpop.f32.mrf.mxu0  ;;  %v1863_v35 = vpop.f32.mrf.mxu1 }
 0x4df   : > { %v1406_v36 = vmax.f32 %v1403_v32, 0.0  ;;  %v1404_v37 = vadd.f32 %v1359_v33, %v2425_v31  ;;  %v1411_v41 = vmul.f32 %v1408_v20, %v2252_v12 }
 0x4e0   : > { %v1361_v19 = vpop.f32.mrf.mxu0 }
 0x4e1   : > { %v1407_v39 = vmax.f32 %v1404_v37, 0.0  ;;  %v1409_v40 = vmul.f32 %v1406_v36, %v2245_v63 }
 0x4e3   : > { %1415 = vrot.lane.b32.xlu0 %v1409_v40, %s2073_s19  ;;  %v1410_v38 = vmul.f32 %v1407_v39, %v2248_v9 }
 0x4e5   : > { %1417 = vrot.lane.b32.xlu1 %v1410_v38, %s2073_s19 }
 0x4e7   : > { %1419 = vrot.lane.b32.xlu0 %v1411_v41, %s2073_s19 }
 0x555   : > { %v1416_v42 = vpop.permute.xlu0 %1415 }
 0x556   : > { %1426 = vst.msk [vmem:[#allocation2] sm:$0xff] %vm947_vm6, %v1416_v42 }
 0x557   : > { %v1418_v43 = vpop.permute.xlu1 %1417 }
 0x558   : > { %v2438_v44 = vsel %vm941_vm8, %v1416_v42, %v1418_v43 }
 0x559   : > { %v1420_v17 = vpop.permute.xlu0 %1419 }
 0x55a   : > { %v1422_v63 = vsel %vm941_vm8, %v1418_v43, %v1420_v17 }
 0x55b   : > { %1428 = vst.msk [vmem:[#allocation2 + $0x10] sm:$0xff] %vm950_vm7, %v1422_v63 }
 0x55d   : > { %v2442_v45 = vld [vmem:[#allocation2] sm:$0xff] }
 0x55e   : > { %1502 = vrot.lane.b32.xlu0 %v2442_v45, %s2077_s25  ;;  %1491 = vrot.lane.b32.xlu1 %v2442_v45, %s2075_s23  ;;  %v1983_v12 = vpack.i.bf16 %v2438_v44, %v2442_v45 }
 0x562   : > { %1480 = vrot.lane.b32.xlu0 %v2442_v45, %s2078_s26  ;;  %1469 = vrot.lane.b32.xlu1 %v2442_v45, %s2074_s20  ;;  %v2452_v9 = vld [vmem:[#allocation2 + $0x10] sm:$0xff] }
 0x563   : > { %v1993_v46 = vpack.i.bf16 %v2452_v9, %v2438_v44 }
 0x566   : > { %1447 = vrot.lane.b32.xlu1 %v2442_v45, %s2076_s24  ;;  %1517 = vrot.lane.b32.xlu0 %v2452_v9, %s2079_s27 }
 0x56a   : > { %1984 = vrot.lane.b32.xlu1 %v1983_v12, %s2079_s27  ;;  %1994 = vrot.lane.b32.xlu0 %v1993_v46, %s2077_s25 }
 0x56e   : > { %1989 = vrot.lane.b32.xlu1 %v1993_v46, %s2075_s23  ;;  %2004 = vrot.lane.b32.xlu0 %v1993_v46, %s2078_s26 }
 0x572   : > { %1999 = vrot.lane.b32.xlu1 %v1993_v46, %s2074_s20  ;;  %2014 = vrot.lane.b32.xlu0 %v1993_v46, %s2081_s0 }
 0x576   : > { %2009 = vrot.lane.b32.xlu1 %v1993_v46, %s2076_s24  ;;  %1458 = vrot.lane.b32.xlu0 %v2442_v45, %s2081_s0  ;;  %s1880_s24 = smul.u32 24, %s2539_s22 }
 0x57a   : > { %2019 = vrot.lane.b32.xlu1 %v1993_v46, %s2080_s28  ;;  %1436 = vrot.lane.b32.xlu0 %v2442_v45, %s2080_s28  ;;  %s555_s28 = scalar_lea.vmem %s2535_s16, %s1880_s24 }
 0x57e   : > { %1542 = vperm.xlu1 %1902, %v1539_v47  }
 0x5d0   : > { %v1492_v48 = vpop.permute.xlu1 %1491  ;;  %v1503_v49 = vpop.permute.xlu0 %1502 }
 0x5d4   : > { %v1470_v50 = vpop.permute.xlu1 %1469  ;;  %v1481_v51 = vpop.permute.xlu0 %1480 }
 0x5d8   : > { %v1448_v52 = vpop.permute.xlu1 %1447  ;;  %v1518_v53 = vpop.permute.xlu0 %1517 }
 0x5d9   : > { %v1538_v54 = vpack.c.bf16 %v1518_v53, %v1518_v53 }
 0x5db   : > { %v1555_v55 = vsel %vm1080_vm10, %v1538_v54, 0 }
 0x5dc   : > { %v1985_v56 = vpop.permute.xlu1 %1984  ;;  %1865 = vmatpush3.bf16.msra.mxu1 %v1555_v55  ;;  %v1995_v57 = vpop.permute.xlu0 %1994 }
 0x5dd   : > { %v1987_v58 = vunpack.i.h.bf16 %v1985_v56  ;;  %v1986_v62 = vunpack.i.l.bf16 %v1985_v56  ;;  %1866 = vmatprep.subr.bf16.mxu1 %v2070_v0  ;;  %v1997_v2 = vunpack.i.h.bf16 %v1995_v57  ;;  %v1996_v3 = vunpack.i.l.bf16 %v1995_v57  ;;  %v1429_v56 = vld [vmem:[%s2533_s14] sm:$0xf] }
 0x5df   : > { %v1520_v4 = vsel %vm1049_vm9, %v1987_v58, %v1518_v53  ;;  %v1519_v5 = vsel %vm1049_vm9, %v1986_v62, %v1987_v58  ;;  %v1508_v15 = vsel %vm1037_vm12, %v1503_v49, %v1996_v3  ;;  %v1509_v18 = vsel %vm1037_vm12, %v1996_v3, %v1997_v2 }
 0x5e0   : > { %v1537_v6 = vpack.c.bf16 %v1520_v4, %v1520_v4  ;;  %v1990_v7 = vpop.permute.xlu1 %1989  ;;  %v2005_v8 = vpop.permute.xlu0 %2004  ;;  %v1536_v11 = vpack.c.bf16 %v1519_v5, %v1519_v5 }
 0x5e1   : > { %v1992_v13 = vunpack.i.h.bf16 %v1990_v7  ;;  %v1991_v14 = vunpack.i.l.bf16 %v1990_v7  ;;  %v2006_v16 = vunpack.i.l.bf16 %v2005_v8  ;;  %v2007_v59 = vunpack.i.h.bf16 %v2005_v8 }
 0x5e2   : > { %1779 = vmatprep.subr.msk.bf16.mxu0 %vm1080_vm10, %v1537_v6  ;;  %v1549_v10 = vsel %vm1080_vm10, %v1536_v11, 0 }
 0x5e3   : > { %v1497_v21 = vsel %vm1025_vm11, %v1492_v48, %v1991_v14  ;;  %v1535_v22 = vpack.c.bf16 %v1997_v2, %v1992_v13  ;;  %1564 = vmatpush1.bf16.msra.mxu0 %v1549_v10  ;;  %v1498_v60 = vsel %vm1025_vm11, %v1991_v14, %v1992_v13  ;;  %v1486_v30 = vsel %vm1013_vm14, %v1481_v51, %v2006_v16 }
 0x5e4   : > { %v1533_v61 = vpack.c.bf16 %v1508_v15, %v1497_v21  ;;  %v2000_v23 = vpop.permute.xlu1 %1999  ;;  %v2015_v24 = vpop.permute.xlu0 %2014  ;;  %v1534_v25 = vpack.c.bf16 %v1509_v18, %v1498_v60  ;;  %v1487_v36 = vsel %vm1013_vm14, %v2006_v16, %v2007_v59 }
 0x5e5   : > { %v2002_v28 = vunpack.i.h.bf16 %v2000_v23  ;;  %v2001_v29 = vunpack.i.l.bf16 %v2000_v23  ;;  %1867 = vmatpush3.bf16.msra.mxu1 %v1535_v22  ;;  %v2017_v1 = vunpack.i.h.bf16 %v2015_v24  ;;  %v2016_v32 = vunpack.i.l.bf16 %v2015_v24 }
 0x5e6   : > { %1565 = vmatprep.subr.bf16.mxu0 %v1534_v25  ;;  %1868 = vmatprep.subr.bf16.mxu1 %v2070_v0 }
 0x5e7   : > { %v1475_v33 = vsel %vm1001_vm13, %v1470_v50, %v2001_v29  ;;  %v1532_v34 = vpack.c.bf16 %v2007_v59, %v2002_v28  ;;  %1566 = vmatpush1.bf16.msra.mxu0 %v1533_v61  ;;  %v1476_v35 = vsel %vm1001_vm13, %v2001_v29, %v2002_v28  ;;  %v1465_v41 = vsel %vm989_vm2, %v2016_v32, %v2017_v1 }
 0x5e8   : > { %v1530_v37 = vpack.c.bf16 %v1486_v30, %v1475_v33  ;;  %v2010_v19 = vpop.permute.xlu1 %2009  ;;  %v1459_v20 = vpop.permute.xlu0 %1458  ;;  %v1531_v39 = vpack.c.bf16 %v1487_v36, %v1476_v35 }
 0x5e9   : > { %v2012_v40 = vunpack.i.h.bf16 %v2010_v19  ;;  %v2011_v38 = vunpack.i.l.bf16 %v2010_v19  ;;  %1869 = vmatpush3.bf16.msra.mxu1 %v1532_v34  ;;  %v1464_v17 = vsel %vm989_vm2, %v1459_v20, %v2016_v32 }
 0x5ea   : > { %1567 = vmatprep.subr.bf16.mxu0 %v1531_v39  ;;  %1870 = vmatprep.subr.bf16.mxu1 %v2070_v0 }
 0x5eb   : > { %v1529_v42 = vpack.c.bf16 %v2017_v1, %v2012_v40  ;;  %v1453_v43 = vsel %vm977_vm15, %v1448_v52, %v2011_v38  ;;  %1568 = vmatpush1.bf16.msra.mxu0 %v1530_v37  ;;  %v1454_v63 = vsel %vm977_vm15, %v2011_v38, %v2012_v40 }
 0x5ec   : > { %v1527_v12 = vpack.c.bf16 %v1464_v17, %v1453_v43  ;;  %v2020_v46 = vpop.permute.xlu1 %2019  ;;  %v1528_v47 = vpack.c.bf16 %v1465_v41, %v1454_v63  ;;  %v1437_v50 = vpop.permute.xlu0 %1436 }
 0x5ed   : > { %v2022_v48 = vunpack.i.h.bf16 %v2020_v46  ;;  %v2021_v49 = vunpack.i.l.bf16 %v2020_v46  ;;  %1871 = vmatpush3.bf16.msra.mxu1 %v1529_v42 }
 0x5ee   : > { %1569 = vmatprep.subr.bf16.mxu0 %v1528_v47  ;;  %1872 = vmatprep.subr.bf16.mxu1 %v2070_v0 }
 0x5ef   : > { %v1526_v51 = vpack.c.bf16 %v2022_v48, %v2452_v9  ;;  %v1442_v53 = vsel %vm965_vm3, %v1437_v50, %v2021_v49  ;;  %1570 = vmatpush1.bf16.msra.mxu0 %v1527_v12  ;;  %v1443_v52 = vsel %vm965_vm3, %v2021_v49, %v2022_v48 }
 0x5f0   : > { %v1524_v54 = vpack.c.bf16 %v1442_v53, %v2442_v45  ;;  %v1525_v55 = vpack.c.bf16 %v1443_v52, %v2438_v44 }
 0x5f1   : > { %1873 = vmatpush3.bf16.msra.mxu1 %v1526_v51 }
 0x5f2   : > { %1571 = vmatprep.subr.bf16.mxu0 %v1525_v55 }
 0x5f3   : > { %1572 = vmatpush1.bf16.msra.mxu0 %v1524_v54 }
 0x5f4   : > { %1875 = vmatmul.mubr.msk.bf16.vlgmr.msra.gmra.mxu1 %vm1076_vm4, %v1429_v56 }
 0x5f6   : > { %1780 = vmatmul.mubr.msk.bf16.vlgmr.msra.gmra.mxu0 %vm1076_vm4, %v1429_v56 }
 0x5f9   : > { %v1543_v0 = vpop.permute.xlu1 %1542 }
 0x6b4   : > { %v1632_v9 = vpop.f32.mrf.mxu1 }
 0x6b5   : > { %v1633_v57 = vadd.f32 %v1632_v9, %v1543_v0 }
 0x6b6   : > { %v1591_v58 = vpop.f32.mrf.mxu0  ;;  %v1876_v62 = vpop.f32.mrf.mxu1 }
 0x6b7   : > { %v1784_v2 = vmul.f32 -1.442695, %v1633_v57  ;;  %v1592_v45 = vadd.f32 %v1591_v58, %v1543_v0 }
 0x6b8   : > { %v1593_v3 = vpop.f32.mrf.mxu0  ;;  %v1635_v44 = vpop.f32.mrf.mxu1 }
 0x6b9   : > { %2050 = vpow2.f32 %v1784_v2  ;;  %v1782_v4 = vmul.f32 -1.442695, %v1592_v45  ;;  %v1594_v5 = vadd.f32 %v1593_v3, %v1543_v0 }
 0x6ba   : > { %v1595_v6 = vpop.f32.mrf.mxu0  ;;  %v1877_v7 = vpop.f32.mrf.mxu1 }
 0x6bb   : > { %2052 = vpow2.f32 %v1782_v4  ;;  %v1783_v8 = vmul.f32 -1.442695, %v1594_v5 }
 0x6bc   : > { %v1596_v11 = vpop.f32.mrf.mxu0 }
 0x6bd   : > { %2054 = vpow2.f32 %v1783_v8 }
 0x6c6   : > { %v2051_v13 = vpop.eup %2050 }
 0x6c7   : > { %v1649_v14 = vadd.f32 1.0, %v2051_v13 }
 0x6c8   : > { %v2053_v15 = vpop.eup %2052 }
 0x6c9   : > { %2056 = vrcp.f32 %v1649_v14  ;;  %v1647_v16 = vadd.f32 1.0, %v2053_v15 }
 0x6ca   : > { %v2055_v10 = vpop.eup %2054 }
 0x6cb   : > { %2058 = vrcp.f32 %v1647_v16  ;;  %v1648_v18 = vadd.f32 1.0, %v2055_v10 }
 0x6cd   : > { %2060 = vrcp.f32 %v1648_v18 }
 0x6d6   : > { %v2057_v21 = vpop.eup %2056 }
 0x6d7   : > { %v1658_v22 = vmul.f32 %v2057_v21, %v2422_v27 }
 0x6d8   : > { %v2059_v59 = vpop.eup %2058 }
 0x6d9   : > { %1661 = vst.msk [vmem:[%s555_s28 + $0x10] sm:$0xff] %vm743_vm1, %v1658_v22  ;;  %v1656_v60 = vmul.f32 %v2059_v59, %v2419_v26 }
 0x6da   : > { %v2061_v61 = vpop.eup %2060 }
 0x6db   : > { %1659 = vst [vmem:[%s555_s28] sm:$0xff] %v1656_v60  ;;  %v1657_v23 = vmul.f32 %v2061_v61, %v2425_v31 }
 0x6dd   : > { %1660 = vst [vmem:[%s555_s28 + $0x8] sm:$0xff] %v1657_v23 }
 0x6de PF: > { %s26_s21 = sadd.s32 1, %s2068_s21  }
 0x6df   : > { %p23_p4 = scmp.ge.s32.totalorder %s26_s21, 4  }
 0x6e1   :  { %25 = sbr.rel (!%p23_p4) target bundleno = 2 (0x2), region = 120 }

</bundles_post_ra>
